<compile_context>
chip_gen: v5e
topology: v5e:2x2
jax: 0.10.0
libtpu: 0.0.40
codegen_flags: <defaults>
</compile_context>

<pallas_src>
import numpy as np
import jax
import jax.numpy as jnp
from jax.experimental import pallas as pl
from jax.experimental.pallas import tpu as pltpu

# ---------------- configuration (matches BC_SPLINE defaults) ----------------
K = 3                                 # spline order
NUM = 3                               # number of grid intervals of the base grid
INPUT_DIM = 8                         # number of splines
HIDDEN = 128
N_KNOTS = NUM + 1 + 2 * K             # 10 knots after extend_grid
N_BASIS = N_KNOTS - K - 1             # 6 basis functions per spline
X_DIM = 39                            # 3 id columns + 36 continuous
EMB_DIM = 8 + 8 + 16 + (X_DIM - 3)    # 68

# Packed layout of grid-derived scalars living in SMEM:
#   [ knots(10) | r1_k1(8) r2_k1(8) | r1_k2(7) r2_k2(7) | r1_k3(6) r2_k3(6) ]
#   r1_k[i] = 1/(t[i+k]-t[i]),  r2_k[i] = 1/(t[i+k+1]-t[i+1])   (hoisted reciprocals)
KNOT_OFF = 0
R1_OFF, R2_OFF = {}, {}
_off = N_KNOTS
for _k in range(1, K + 1):
    _n = N_KNOTS - _k - 1
    R1_OFF[_k] = _off
    _off += _n
    R2_OFF[_k] = _off
    _off += _n
SPL_LEN = _off                        # 52


# ------------------------------- Pallas kernel -------------------------------
def bc_spline_kernel(spl_ref, emb_ref, bud_ref,
                     w1_ref, b1_ref, w2_ref, b2_ref,
                     wh1_ref, bh1_ref, w2h_ref, b2h_ref,
                     out_ref):
    """One batch tile. Layout: features on sublanes, batch on the 128-lane axis."""

    def mm(w_ref, act):
        w = w_ref[...]
        if w.dtype != act.dtype:              # optional bf16 MXU operands
            act = act.astype(w.dtype)
        return jnp.dot(w, act, preferred_element_type=jnp.float32)

    # ---- MLP stack on the MXU:  (out_feat, in_feat) @ (in_feat, TB) ----
    emb = emb_ref[...]                                          # (68,  TB)
    h1 = jnp.maximum(mm(w1_ref, emb) + b1_ref[...], 0.0)        # (128, TB)
    feat = jnp.maximum(mm(w2_ref, h1) + b2_ref[...], 0.0)       # (128, TB)
    heads = jnp.maximum(mm(wh1_ref, feat) + bh1_ref[...], 0.0)  # (256, TB) = [coef_h | base_h]
    # block-diagonal second head layer: rows 0..5 = spline-folded coef, row 6 = scale_base
    out2 = mm(w2h_ref, heads) + b2h_ref[...]                    # (8,   TB)

    # TODO(synk): scale_sp_net is evaluated in the PyTorch forward but its output is
    # never used for y_pred; it is omitted here.

    # ---- B-spline bases on the VPU: lane-dense (A, TB) arrays, scalar knots from SMEM ----
    x = bud_ref[...]                                            # (A, TB) f32
    d = [x - spl_ref[KNOT_OFF + i] for i in range(N_KNOTS)]     # x - t_i, reused at all levels
    # order 0:  B0_i = [t_i <= x < t_{i+1}]
    b = [jnp.where((d[i] >= 0.0) & (d[i + 1] < 0.0), 1.0, 0.0)
         for i in range(N_KNOTS - 1)]
    # Cox-de Boor recursion with hoisted reciprocal denominators (no divides, no NaN select)
    for k in range(1, K + 1):
        r1o, r2o = R1_OFF[k], R2_OFF[k]
        b = [d[i] * spl_ref[r1o + i] * b[i]
             - d[i + k + 1] * spl_ref[r2o + i] * b[i + 1]
             for i in range(N_KNOTS - k - 1)]

    # ---- contraction with the spline-folded coefficients + SiLU base + scale ----
    y = b[0] * out2[0:1, :]
    for kk in range(1, N_BASIS):
        y = y + b[kk] * out2[kk:kk + 1, :]                      # (A, TB)
    base = x * jax.nn.sigmoid(x)                                # SiLU(budget)
    scale_base = out2[N_BASIS:N_BASIS + 1, :]                   # (1, TB)
    # mean_j(s*base + s*y_j) = s*(base + mean_j(y_j)); the /8 is folded into wc2/bc2.
    out_ref[...] = scale_base * (base + y)                      # lane-dense store


# --------------------------------- wrapper ------------------------------------
def _spline_scalars(grid):
    """Pack knots + hoisted reciprocal denominators for the SMEM operand."""
    t = grid[0].astype(jnp.float32)                             # all rows identical
    pieces = [t]
    for k in range(1, K + 1):
        i = jnp.arange(N_KNOTS - k - 1)
        pieces.append(1.0 / (t[i + k] - t[i]))
        pieces.append(1.0 / (t[i + k + 1] - t[i + 1]))
    return jnp.concatenate(pieces)                              # (SPL_LEN,)


def bc_spline_forward(params, x, budget, *, tb=None, use_bf16=False):
    B = x.shape[0]
    A = budget.shape[1]

    # --- glue: embedding gathers + concat (plain JAX) ---
    id_emb = jnp.take(params['id_embedding'], x[:, 1].astype(jnp.int32), axis=0)
    period_emb = jnp.take(params['period_embedding'], x[:, 0].astype(jnp.int32), axis=0)
    time_emb = jnp.take(params['time_embedding'], x[:, 2].astype(jnp.int32), axis=0)
    emb = jnp.concatenate([id_emb, period_emb, time_emb, x[:, 3:]], axis=1).astype(jnp.float32)

    # --- guard for the spline fold: all grid rows must be identical & strictly increasing ---
    grid = params['grid']
    try:
        g = np.asarray(grid)
        assert np.all(g == g[:1]), "per-spline grids differ: wc2/bc2 spline fold is invalid"
        assert np.all(np.diff(g[0]) > 0), "grid knots must be strictly increasing"
    except (jax.errors.TracerArrayConversionError, jax.errors.ConcretizationTypeError):
        pass  # traced grid: caller must guarantee identical, strictly-increasing rows

    # --- kernel-facing parameters (weights as (out, in) so the kernel computes W @ act) ---
    mm_dtype = jnp.bfloat16 if use_bf16 else jnp.float32
    w1t = params['w1'].T.astype(mm_dtype)                       # (128, 68)
    b1c = params['b1'].T                                        # (128, 1)
    w2t = params['w2'].T.astype(mm_dtype)                       # (128, 128)
    b2c = params['b2'].T
    # fused first head layer: coef_net.0 || scale_base_net.0
    wh1t = jnp.concatenate([params['wc1'], params['wb1']], axis=1).T.astype(mm_dtype)  # (256, 128)
    bh1c = jnp.concatenate([params['bc1'], params['bb1']], axis=1).T                   # (256, 1)
    # spline fold: mean over the 8 identical splines is pushed into wc2/bc2 (sum/8)
    wc2_eff = params['wc2'].reshape(HIDDEN, INPUT_DIM, N_BASIS).sum(axis=1) / INPUT_DIM  # (128, 6)
    bc2_eff = params['bc2'].reshape(INPUT_DIM, N_BASIS).sum(axis=0) / INPUT_DIM          # (6,)
    # block-diagonal second head layer: rows 0..5 folded coef, row 6 scale_base, row 7 unused
    w2h = jnp.zeros((8, 2 * HIDDEN), jnp.float32)
    w2h = w2h.at[:N_BASIS, :HIDDEN].set(wc2_eff.T)
    w2h = w2h.at[N_BASIS, HIDDEN:].set(params['wb2'][:, 0])
    w2h = w2h.astype(mm_dtype)
    b2h = jnp.zeros((8, 1), jnp.float32)
    b2h = b2h.at[:N_BASIS, 0].set(bc2_eff)
    b2h = b2h.at[N_BASIS, 0].set(params['bb2'][0, 0])
    spl = _spline_scalars(grid)

    # --- batch tiling: batch rides the 128-lane axis; pad B up to a multiple of TB ---
    if tb is None:
        tb = min(512, pl.cdiv(B, 128) * 128)    # lane-dense tile, VMEM-safe on v7x
    assert tb % 128 == 0, "batch tile must be a multiple of 128 lanes"
    Bp = pl.cdiv(B, tb) * tb
    budget = budget.astype(jnp.float32)
    if Bp != B:
        emb = jnp.pad(emb, ((0, Bp - B), (0, 0)))
        budget = jnp.pad(budget, ((0, Bp - B), (0, 0)))
    emb_t = emb.T                                               # (68, Bp)
    bud_t = budget.T                                            # (A,  Bp)

    weights = (w1t, b1c, w2t, b2c, wh1t, bh1c, w2h, b2h)

    def const_spec(arr):                                        # full block, constant index
        return pl.BlockSpec(arr.shape, lambda i: (0,) * arr.ndim)

    in_specs = ([pl.BlockSpec(memory_space=pltpu.MemorySpace.SMEM),   # packed grid scalars
                 pl.BlockSpec((EMB_DIM, tb), lambda i: (0, i)),
                 pl.BlockSpec((A, tb), lambda i: (0, i))]
                + [const_spec(w) for w in weights])
    out_spec = pl.BlockSpec((A, tb), lambda i: (0, i))

    fn = pl.pallas_call(
        bc_spline_kernel,
        out_shape=jax.ShapeDtypeStruct((A, Bp), jnp.float32),
        grid=(Bp // tb,),
        in_specs=in_specs,
        out_specs=out_spec,
        compiler_params=pltpu.CompilerParams(dimension_semantics=("parallel",)),
    )
    out_t = fn(spl, emb_t, bud_t, *weights)                     # (A, Bp)
    return out_t[:, :B].T                                       # back to (B, A)


# ------------------------ deterministic parameter init ------------------------
def init_params(key):
    keys = jax.random.split(key, 16)

    def dense(k, fan_in, fan_out):
        lim = 1.0 / jnp.sqrt(jnp.float32(fan_in))
        kw, kb = jax.random.split(k)
        w = jax.random.uniform(kw, (fan_in, fan_out), jnp.float32, -lim, lim)
        b = jax.random.uniform(kb, (1, fan_out), jnp.float32, -lim, lim)
        return w, b

    p = {}
    p['id_embedding'] = 0.1 * jax.random.normal(keys[0], (48, 8), jnp.float32)
    p['period_embedding'] = 0.1 * jax.random.normal(keys[1], (8, 8), jnp.float32)
    p['time_embedding'] = 0.1 * jax.random.normal(keys[2], (48, 16), jnp.float32)
    p['w1'], p['b1'] = dense(keys[3], EMB_DIM, HIDDEN)
    p['w2'], p['b2'] = dense(keys[4], HIDDEN, HIDDEN)
    p['wc1'], p['bc1'] = dense(keys[5], HIDDEN, HIDDEN)
    p['wc2'], p['bc2'] = dense(keys[6], HIDDEN, INPUT_DIM * N_BASIS)
    p['wb1'], p['bb1'] = dense(keys[7], HIDDEN, HIDDEN)
    p['wb2'], p['bb2'] = dense(keys[8], HIDDEN, 1)

    # grid = extend_grid(linspace(-1, 1, num+1).expand(input_dim, num+1), k)
    g = jnp.broadcast_to(jnp.linspace(-1.0, 1.0, NUM + 1), (INPUT_DIM, NUM + 1))
    h = (g[:, -1:] - g[:, :1]) / (g.shape[1] - 1)
    for _ in range(K):
        g = jnp.concatenate([g[:, :1] - h, g, g[:, -1:] + h], axis=1)
    p['grid'] = g.astype(jnp.float32)
    return p


# ------------------------------ pure-JAX reference -----------------------------
def _b_batch_ref(x, grid, k):
    """Mirror of kan.spline.B_batch (division form, NaN->0 like torch.nan_to_num)."""
    if k == 0:
        return ((x >= grid[..., :-1]) & (x < grid[..., 1:])).astype(jnp.float32)
    bkm1 = _b_batch_ref(x, grid, k - 1)
    t1 = (x - grid[..., : -(k + 1)]) / (grid[..., k:-1] - grid[..., : -(k + 1)])
    t2 = (grid[..., k + 1:] - x) / (grid[..., k + 1:] - grid[..., 1:-k])
    val = t1 * bkm1[..., :-1] + t2 * bkm1[..., 1:]
    return jnp.where(jnp.isnan(val), 0.0, val)


def bc_spline_reference(params, x, budget):
    id_emb = params['id_embedding'][x[:, 1].astype(jnp.int32)]
    period_emb = params['period_embedding'][x[:, 0].astype(jnp.int32)]
    time_emb = params['time_embedding'][x[:, 2].astype(jnp.int32)]
    emb = jnp.concatenate([id_emb, period_emb, time_emb, x[:, 3:]], axis=1)
    feat = jnp.maximum(jnp.maximum(emb @ params['w1'] + params['b1'], 0.0)
                       @ params['w2'] + params['b2'], 0.0)
    coef = jnp.maximum(feat @ params['wc1'] + params['bc1'], 0.0) @ params['wc2'] + params['bc2']
    coef = coef.reshape(x.shape[0], INPUT_DIM, 1, N_BASIS)
    scale_base = jnp.maximum(feat @ params['wb1'] + params['bb1'], 0.0) @ params['wb2'] + params['bb2']
    scale_base = scale_base[:, None, :]                                   # (B, 1, 1)
    Bs = _b_batch_ref(budget[:, :, None, None], params['grid'][None, None], K)  # (B, A, 8, 6)
    base = budget * jax.nn.sigmoid(budget)
    y = jnp.einsum('bajk,bjlk->bajl', Bs, coef)[..., 0]                   # (B, A, 8)
    y = scale_base * base[:, :, None] + scale_base * y
    return jnp.mean(y, axis=-1)                                           # (B, A)


if __name__ == "__main__":
    key = jax.random.PRNGKey(0)
    kp, kidx, kx, kb = jax.random.split(key, 4)
    params = init_params(kp)

    # Small but tiling-exercising shapes: B=300 is not a multiple of the 128-lane
    # batch tile, so both the padding path and a 3-step "parallel" grid are covered.
    B, A = 300, 16
    # x columns: 0 = period id in [0,8), 1 = advertiser id in [0,48),
    # 2 = time id in [0,48), 3..38 = 36 continuous features (total 39).
    k0, k1, k2 = jax.random.split(kidx, 3)
    period = jax.random.randint(k0, (B, 1), 0, 8).astype(jnp.float32)
    adv = jax.random.randint(k1, (B, 1), 0, 48).astype(jnp.float32)
    tm = jax.random.randint(k2, (B, 1), 0, 48).astype(jnp.float32)
    feats = jax.random.normal(kx, (B, X_DIM - 3), jnp.float32)
    x = jnp.concatenate([period, adv, tm, feats], axis=1)          # (300, 39)
    budget = jax.random.uniform(kb, (B, A), jnp.float32, -1.0, 1.0)

    out = jax.block_until_ready(bc_spline_forward(params, x, budget, tb=128))
    ref = bc_spline_reference(params, x, budget)
    assert out.shape == (B, A)
    err = float(jnp.max(jnp.abs(out - ref)))
    assert jnp.allclose(out, ref, atol=1e-3, rtol=1e-3), err
    print("KERNEL_OK")
</pallas_src>

<mosaic_0001>
module attributes {stable_mosaic.version = 11 : i64} {
  func.func @bc_spline_kernel(%arg0: i32, %arg1: memref<52xf32, #tpu.memory_space<smem>>, %arg2: memref<68x128xf32, #tpu.memory_space<vmem>>, %arg3: memref<16x128xf32, #tpu.memory_space<vmem>>, %arg4: memref<128x68xf32, #tpu.memory_space<vmem>>, %arg5: memref<128x1xf32, #tpu.memory_space<vmem>>, %arg6: memref<128x128xf32, #tpu.memory_space<vmem>>, %arg7: memref<128x1xf32, #tpu.memory_space<vmem>>, %arg8: memref<256x128xf32, #tpu.memory_space<vmem>>, %arg9: memref<256x1xf32, #tpu.memory_space<vmem>>, %arg10: memref<8x256xf32, #tpu.memory_space<vmem>>, %arg11: memref<8x1xf32, #tpu.memory_space<vmem>>, %arg12: memref<16x128xf32, #tpu.memory_space<vmem>>) attributes {dimension_semantics = [#tpu.dimension_semantics<parallel>], iteration_bounds = array<i64: 3>, scalar_prefetch = 0 : i64, scratch_operands = 0 : i64, tpu.core_type = #tpu.core_type<tc>, window_params = [{transform_indices = @transform_0, window_bounds = array<i64: 52>}, {transform_indices = @transform_1, window_bounds = array<i64: 68, 128>}, {transform_indices = @transform_2, window_bounds = array<i64: 16, 128>}, {pipeline_mode = #tpu.pipeline_mode<synchronous>, transform_indices = @transform_3, window_bounds = array<i64: 128, 68>}, {pipeline_mode = #tpu.pipeline_mode<synchronous>, transform_indices = @transform_4, window_bounds = array<i64: 128, 1>}, {pipeline_mode = #tpu.pipeline_mode<synchronous>, transform_indices = @transform_5, window_bounds = array<i64: 128, 128>}, {pipeline_mode = #tpu.pipeline_mode<synchronous>, transform_indices = @transform_6, window_bounds = array<i64: 128, 1>}, {pipeline_mode = #tpu.pipeline_mode<synchronous>, transform_indices = @transform_7, window_bounds = array<i64: 256, 128>}, {pipeline_mode = #tpu.pipeline_mode<synchronous>, transform_indices = @transform_8, window_bounds = array<i64: 256, 1>}, {pipeline_mode = #tpu.pipeline_mode<synchronous>, transform_indices = @transform_9, window_bounds = array<i64: 8, 256>}, {pipeline_mode = #tpu.pipeline_mode<synchronous>, transform_indices = @transform_10, window_bounds = array<i64: 8, 1>}, {transform_indices = @transform_11, window_bounds = array<i64: 16, 128>}]} {
    %c0 = arith.constant 0 : index
    %c0_0 = arith.constant 0 : index
    %0 = vector.load %arg2[%c0, %c0_0] : memref<68x128xf32, #tpu.memory_space<vmem>>, vector<68x128xf32>
    %c0_1 = arith.constant 0 : index
    %c0_2 = arith.constant 0 : index
    %1 = vector.load %arg4[%c0_1, %c0_2] : memref<128x68xf32, #tpu.memory_space<vmem>>, vector<128x68xf32>
    %cst = arith.constant dense<0.000000e+00> : vector<128x128xf32>
    %2 = tpu.matmul %1, %0, %cst {dimension_numbers = #tpu.dot_dimension_numbers<[1], [0], [0], [1], [0, 0, 1, 1], [], []>} : vector<128x68xf32>, vector<68x128xf32>, vector<128x128xf32> -> vector<128x128xf32>
    %c0_3 = arith.constant 0 : index
    %c0_4 = arith.constant 0 : index
    %3 = vector.load %arg5[%c0_3, %c0_4] : memref<128x1xf32, #tpu.memory_space<vmem>>, vector<128x1xf32>
    %4 = vector.broadcast %3 : vector<128x1xf32> to vector<128x128xf32>
    %5 = arith.addf %2, %4 : vector<128x128xf32>
    %cst_5 = arith.constant 0.000000e+00 : f32
    %6 = vector.broadcast %cst_5 : f32 to vector<128x128xf32>
    %7 = arith.maximumf %5, %6 : vector<128x128xf32>
    %c0_6 = arith.constant 0 : index
    %c0_7 = arith.constant 0 : index
    %8 = vector.load %arg6[%c0_6, %c0_7] : memref<128x128xf32, #tpu.memory_space<vmem>>, vector<128x128xf32>
    %cst_8 = arith.constant dense<0.000000e+00> : vector<128x128xf32>
    %9 = tpu.matmul %8, %7, %cst_8 {dimension_numbers = #tpu.dot_dimension_numbers<[1], [0], [0], [1], [0, 0, 1, 1], [], []>} : vector<128x128xf32>, vector<128x128xf32>, vector<128x128xf32> -> vector<128x128xf32>
    %c0_9 = arith.constant 0 : index
    %c0_10 = arith.constant 0 : index
    %10 = vector.load %arg7[%c0_9, %c0_10] : memref<128x1xf32, #tpu.memory_space<vmem>>, vector<128x1xf32>
    %11 = vector.broadcast %10 : vector<128x1xf32> to vector<128x128xf32>
    %12 = arith.addf %9, %11 : vector<128x128xf32>
    %cst_11 = arith.constant 0.000000e+00 : f32
    %13 = vector.broadcast %cst_11 : f32 to vector<128x128xf32>
    %14 = arith.maximumf %12, %13 : vector<128x128xf32>
    %c0_12 = arith.constant 0 : index
    %c0_13 = arith.constant 0 : index
    %15 = vector.load %arg8[%c0_12, %c0_13] : memref<256x128xf32, #tpu.memory_space<vmem>>, vector<256x128xf32>
    %cst_14 = arith.constant dense<0.000000e+00> : vector<256x128xf32>
    %16 = tpu.matmul %15, %14, %cst_14 {dimension_numbers = #tpu.dot_dimension_numbers<[1], [0], [0], [1], [0, 0, 1, 1], [], []>} : vector<256x128xf32>, vector<128x128xf32>, vector<256x128xf32> -> vector<256x128xf32>
    %c0_15 = arith.constant 0 : index
    %c0_16 = arith.constant 0 : index
    %17 = vector.load %arg9[%c0_15, %c0_16] : memref<256x1xf32, #tpu.memory_space<vmem>>, vector<256x1xf32>
    %18 = vector.broadcast %17 : vector<256x1xf32> to vector<256x128xf32>
    %19 = arith.addf %16, %18 : vector<256x128xf32>
    %cst_17 = arith.constant 0.000000e+00 : f32
    %20 = vector.broadcast %cst_17 : f32 to vector<256x128xf32>
    %21 = arith.maximumf %19, %20 : vector<256x128xf32>
    %c0_18 = arith.constant 0 : index
    %c0_19 = arith.constant 0 : index
    %22 = vector.load %arg10[%c0_18, %c0_19] : memref<8x256xf32, #tpu.memory_space<vmem>>, vector<8x256xf32>
    %cst_20 = arith.constant dense<0.000000e+00> : vector<8x128xf32>
    %23 = tpu.matmul %22, %21, %cst_20 {dimension_numbers = #tpu.dot_dimension_numbers<[1], [0], [0], [1], [0, 0, 1, 1], [], []>} : vector<8x256xf32>, vector<256x128xf32>, vector<8x128xf32> -> vector<8x128xf32>
    %c0_21 = arith.constant 0 : index
    %c0_22 = arith.constant 0 : index
    %24 = vector.load %arg11[%c0_21, %c0_22] : memref<8x1xf32, #tpu.memory_space<vmem>>, vector<8x1xf32>
    %25 = vector.broadcast %24 : vector<8x1xf32> to vector<8x128xf32>
    %26 = arith.addf %23, %25 : vector<8x128xf32>
    %c0_23 = arith.constant 0 : index
    %c0_24 = arith.constant 0 : index
    %27 = vector.load %arg3[%c0_23, %c0_24] : memref<16x128xf32, #tpu.memory_space<vmem>>, vector<16x128xf32>
    %c0_25 = arith.constant 0 : index
    %28 = memref.load %arg1[%c0_25] : memref<52xf32, #tpu.memory_space<smem>>
    %29 = vector.broadcast %28 : f32 to vector<16x128xf32>
    %30 = arith.subf %27, %29 : vector<16x128xf32>
    %c1 = arith.constant 1 : index
    %31 = memref.load %arg1[%c1] : memref<52xf32, #tpu.memory_space<smem>>
    %32 = vector.broadcast %31 : f32 to vector<16x128xf32>
    %33 = arith.subf %27, %32 : vector<16x128xf32>
    %c2 = arith.constant 2 : index
    %34 = memref.load %arg1[%c2] : memref<52xf32, #tpu.memory_space<smem>>
    %35 = vector.broadcast %34 : f32 to vector<16x128xf32>
    %36 = arith.subf %27, %35 : vector<16x128xf32>
    %c3 = arith.constant 3 : index
    %37 = memref.load %arg1[%c3] : memref<52xf32, #tpu.memory_space<smem>>
    %38 = vector.broadcast %37 : f32 to vector<16x128xf32>
    %39 = arith.subf %27, %38 : vector<16x128xf32>
    %c4 = arith.constant 4 : index
    %40 = memref.load %arg1[%c4] : memref<52xf32, #tpu.memory_space<smem>>
    %41 = vector.broadcast %40 : f32 to vector<16x128xf32>
    %42 = arith.subf %27, %41 : vector<16x128xf32>
    %c5 = arith.constant 5 : index
    %43 = memref.load %arg1[%c5] : memref<52xf32, #tpu.memory_space<smem>>
    %44 = vector.broadcast %43 : f32 to vector<16x128xf32>
    %45 = arith.subf %27, %44 : vector<16x128xf32>
    %c6 = arith.constant 6 : index
    %46 = memref.load %arg1[%c6] : memref<52xf32, #tpu.memory_space<smem>>
    %47 = vector.broadcast %46 : f32 to vector<16x128xf32>
    %48 = arith.subf %27, %47 : vector<16x128xf32>
    %c7 = arith.constant 7 : index
    %49 = memref.load %arg1[%c7] : memref<52xf32, #tpu.memory_space<smem>>
    %50 = vector.broadcast %49 : f32 to vector<16x128xf32>
    %51 = arith.subf %27, %50 : vector<16x128xf32>
    %c8 = arith.constant 8 : index
    %52 = memref.load %arg1[%c8] : memref<52xf32, #tpu.memory_space<smem>>
    %53 = vector.broadcast %52 : f32 to vector<16x128xf32>
    %54 = arith.subf %27, %53 : vector<16x128xf32>
    %c9 = arith.constant 9 : index
    %55 = memref.load %arg1[%c9] : memref<52xf32, #tpu.memory_space<smem>>
    %56 = vector.broadcast %55 : f32 to vector<16x128xf32>
    %57 = arith.subf %27, %56 : vector<16x128xf32>
    %cst_26 = arith.constant 0.000000e+00 : f32
    %58 = vector.broadcast %cst_26 : f32 to vector<16x128xf32>
    %59 = arith.cmpf oge, %30, %58 : vector<16x128xf32>
    %cst_27 = arith.constant 0.000000e+00 : f32
    %60 = vector.broadcast %cst_27 : f32 to vector<16x128xf32>
    %61 = arith.cmpf olt, %33, %60 : vector<16x128xf32>
    %62 = arith.andi %59, %61 : vector<16x128xi1>
    %cst_28 = arith.constant 1.000000e+00 : f32
    %cst_29 = arith.constant 0.000000e+00 : f32
    %63 = vector.broadcast %cst_28 : f32 to vector<16x128xf32>
    %64 = vector.broadcast %cst_29 : f32 to vector<16x128xf32>
    %65 = arith.select %62, %63, %64 : vector<16x128xi1>, vector<16x128xf32>
    %cst_30 = arith.constant 0.000000e+00 : f32
    %66 = vector.broadcast %cst_30 : f32 to vector<16x128xf32>
    %67 = arith.cmpf oge, %33, %66 : vector<16x128xf32>
    %cst_31 = arith.constant 0.000000e+00 : f32
    %68 = vector.broadcast %cst_31 : f32 to vector<16x128xf32>
    %69 = arith.cmpf olt, %36, %68 : vector<16x128xf32>
    %70 = arith.andi %67, %69 : vector<16x128xi1>
    %cst_32 = arith.constant 1.000000e+00 : f32
    %cst_33 = arith.constant 0.000000e+00 : f32
    %71 = vector.broadcast %cst_32 : f32 to vector<16x128xf32>
    %72 = vector.broadcast %cst_33 : f32 to vector<16x128xf32>
    %73 = arith.select %70, %71, %72 : vector<16x128xi1>, vector<16x128xf32>
    %cst_34 = arith.constant 0.000000e+00 : f32
    %74 = vector.broadcast %cst_34 : f32 to vector<16x128xf32>
    %75 = arith.cmpf oge, %36, %74 : vector<16x128xf32>
    %cst_35 = arith.constant 0.000000e+00 : f32
    %76 = vector.broadcast %cst_35 : f32 to vector<16x128xf32>
    %77 = arith.cmpf olt, %39, %76 : vector<16x128xf32>
    %78 = arith.andi %75, %77 : vector<16x128xi1>
    %cst_36 = arith.constant 1.000000e+00 : f32
    %cst_37 = arith.constant 0.000000e+00 : f32
    %79 = vector.broadcast %cst_36 : f32 to vector<16x128xf32>
    %80 = vector.broadcast %cst_37 : f32 to vector<16x128xf32>
    %81 = arith.select %78, %79, %80 : vector<16x128xi1>, vector<16x128xf32>
    %cst_38 = arith.constant 0.000000e+00 : f32
    %82 = vector.broadcast %cst_38 : f32 to vector<16x128xf32>
    %83 = arith.cmpf oge, %39, %82 : vector<16x128xf32>
    %cst_39 = arith.constant 0.000000e+00 : f32
    %84 = vector.broadcast %cst_39 : f32 to vector<16x128xf32>
    %85 = arith.cmpf olt, %42, %84 : vector<16x128xf32>
    %86 = arith.andi %83, %85 : vector<16x128xi1>
    %cst_40 = arith.constant 1.000000e+00 : f32
    %cst_41 = arith.constant 0.000000e+00 : f32
    %87 = vector.broadcast %cst_40 : f32 to vector<16x128xf32>
    %88 = vector.broadcast %cst_41 : f32 to vector<16x128xf32>
    %89 = arith.select %86, %87, %88 : vector<16x128xi1>, vector<16x128xf32>
    %cst_42 = arith.constant 0.000000e+00 : f32
    %90 = vector.broadcast %cst_42 : f32 to vector<16x128xf32>
    %91 = arith.cmpf oge, %42, %90 : vector<16x128xf32>
    %cst_43 = arith.constant 0.000000e+00 : f32
    %92 = vector.broadcast %cst_43 : f32 to vector<16x128xf32>
    %93 = arith.cmpf olt, %45, %92 : vector<16x128xf32>
    %94 = arith.andi %91, %93 : vector<16x128xi1>
    %cst_44 = arith.constant 1.000000e+00 : f32
    %cst_45 = arith.constant 0.000000e+00 : f32
    %95 = vector.broadcast %cst_44 : f32 to vector<16x128xf32>
    %96 = vector.broadcast %cst_45 : f32 to vector<16x128xf32>
    %97 = arith.select %94, %95, %96 : vector<16x128xi1>, vector<16x128xf32>
    %cst_46 = arith.constant 0.000000e+00 : f32
    %98 = vector.broadcast %cst_46 : f32 to vector<16x128xf32>
    %99 = arith.cmpf oge, %45, %98 : vector<16x128xf32>
    %cst_47 = arith.constant 0.000000e+00 : f32
    %100 = vector.broadcast %cst_47 : f32 to vector<16x128xf32>
    %101 = arith.cmpf olt, %48, %100 : vector<16x128xf32>
    %102 = arith.andi %99, %101 : vector<16x128xi1>
    %cst_48 = arith.constant 1.000000e+00 : f32
    %cst_49 = arith.constant 0.000000e+00 : f32
    %103 = vector.broadcast %cst_48 : f32 to vector<16x128xf32>
    %104 = vector.broadcast %cst_49 : f32 to vector<16x128xf32>
    %105 = arith.select %102, %103, %104 : vector<16x128xi1>, vector<16x128xf32>
    %cst_50 = arith.constant 0.000000e+00 : f32
    %106 = vector.broadcast %cst_50 : f32 to vector<16x128xf32>
    %107 = arith.cmpf oge, %48, %106 : vector<16x128xf32>
    %cst_51 = arith.constant 0.000000e+00 : f32
    %108 = vector.broadcast %cst_51 : f32 to vector<16x128xf32>
    %109 = arith.cmpf olt, %51, %108 : vector<16x128xf32>
    %110 = arith.andi %107, %109 : vector<16x128xi1>
    %cst_52 = arith.constant 1.000000e+00 : f32
    %cst_53 = arith.constant 0.000000e+00 : f32
    %111 = vector.broadcast %cst_52 : f32 to vector<16x128xf32>
    %112 = vector.broadcast %cst_53 : f32 to vector<16x128xf32>
    %113 = arith.select %110, %111, %112 : vector<16x128xi1>, vector<16x128xf32>
    %cst_54 = arith.constant 0.000000e+00 : f32
    %114 = vector.broadcast %cst_54 : f32 to vector<16x128xf32>
    %115 = arith.cmpf oge, %51, %114 : vector<16x128xf32>
    %cst_55 = arith.constant 0.000000e+00 : f32
    %116 = vector.broadcast %cst_55 : f32 to vector<16x128xf32>
    %117 = arith.cmpf olt, %54, %116 : vector<16x128xf32>
    %118 = arith.andi %115, %117 : vector<16x128xi1>
    %cst_56 = arith.constant 1.000000e+00 : f32
    %cst_57 = arith.constant 0.000000e+00 : f32
    %119 = vector.broadcast %cst_56 : f32 to vector<16x128xf32>
    %120 = vector.broadcast %cst_57 : f32 to vector<16x128xf32>
    %121 = arith.select %118, %119, %120 : vector<16x128xi1>, vector<16x128xf32>
    %cst_58 = arith.constant 0.000000e+00 : f32
    %122 = vector.broadcast %cst_58 : f32 to vector<16x128xf32>
    %123 = arith.cmpf oge, %54, %122 : vector<16x128xf32>
    %cst_59 = arith.constant 0.000000e+00 : f32
    %124 = vector.broadcast %cst_59 : f32 to vector<16x128xf32>
    %125 = arith.cmpf olt, %57, %124 : vector<16x128xf32>
    %126 = arith.andi %123, %125 : vector<16x128xi1>
    %cst_60 = arith.constant 1.000000e+00 : f32
    %cst_61 = arith.constant 0.000000e+00 : f32
    %127 = vector.broadcast %cst_60 : f32 to vector<16x128xf32>
    %128 = vector.broadcast %cst_61 : f32 to vector<16x128xf32>
    %129 = arith.select %126, %127, %128 : vector<16x128xi1>, vector<16x128xf32>
    %c10 = arith.constant 10 : index
    %130 = memref.load %arg1[%c10] : memref<52xf32, #tpu.memory_space<smem>>
    %131 = vector.broadcast %130 : f32 to vector<16x128xf32>
    %132 = arith.mulf %30, %131 : vector<16x128xf32>
    %133 = arith.mulf %132, %65 : vector<16x128xf32>
    %c18 = arith.constant 18 : index
    %134 = memref.load %arg1[%c18] : memref<52xf32, #tpu.memory_space<smem>>
    %135 = vector.broadcast %134 : f32 to vector<16x128xf32>
    %136 = arith.mulf %36, %135 : vector<16x128xf32>
    %137 = arith.mulf %136, %73 : vector<16x128xf32>
    %138 = arith.subf %133, %137 : vector<16x128xf32>
    %c11 = arith.constant 11 : index
    %139 = memref.load %arg1[%c11] : memref<52xf32, #tpu.memory_space<smem>>
    %140 = vector.broadcast %139 : f32 to vector<16x128xf32>
    %141 = arith.mulf %33, %140 : vector<16x128xf32>
    %142 = arith.mulf %141, %73 : vector<16x128xf32>
    %c19 = arith.constant 19 : index
    %143 = memref.load %arg1[%c19] : memref<52xf32, #tpu.memory_space<smem>>
    %144 = vector.broadcast %143 : f32 to vector<16x128xf32>
    %145 = arith.mulf %39, %144 : vector<16x128xf32>
    %146 = arith.mulf %145, %81 : vector<16x128xf32>
    %147 = arith.subf %142, %146 : vector<16x128xf32>
    %c12 = arith.constant 12 : index
    %148 = memref.load %arg1[%c12] : memref<52xf32, #tpu.memory_space<smem>>
    %149 = vector.broadcast %148 : f32 to vector<16x128xf32>
    %150 = arith.mulf %36, %149 : vector<16x128xf32>
    %151 = arith.mulf %150, %81 : vector<16x128xf32>
    %c20 = arith.constant 20 : index
    %152 = memref.load %arg1[%c20] : memref<52xf32, #tpu.memory_space<smem>>
    %153 = vector.broadcast %152 : f32 to vector<16x128xf32>
    %154 = arith.mulf %42, %153 : vector<16x128xf32>
    %155 = arith.mulf %154, %89 : vector<16x128xf32>
    %156 = arith.subf %151, %155 : vector<16x128xf32>
    %c13 = arith.constant 13 : index
    %157 = memref.load %arg1[%c13] : memref<52xf32, #tpu.memory_space<smem>>
    %158 = vector.broadcast %157 : f32 to vector<16x128xf32>
    %159 = arith.mulf %39, %158 : vector<16x128xf32>
    %160 = arith.mulf %159, %89 : vector<16x128xf32>
    %c21 = arith.constant 21 : index
    %161 = memref.load %arg1[%c21] : memref<52xf32, #tpu.memory_space<smem>>
    %162 = vector.broadcast %161 : f32 to vector<16x128xf32>
    %163 = arith.mulf %45, %162 : vector<16x128xf32>
    %164 = arith.mulf %163, %97 : vector<16x128xf32>
    %165 = arith.subf %160, %164 : vector<16x128xf32>
    %c14 = arith.constant 14 : index
    %166 = memref.load %arg1[%c14] : memref<52xf32, #tpu.memory_space<smem>>
    %167 = vector.broadcast %166 : f32 to vector<16x128xf32>
    %168 = arith.mulf %42, %167 : vector<16x128xf32>
    %169 = arith.mulf %168, %97 : vector<16x128xf32>
    %c22 = arith.constant 22 : index
    %170 = memref.load %arg1[%c22] : memref<52xf32, #tpu.memory_space<smem>>
    %171 = vector.broadcast %170 : f32 to vector<16x128xf32>
    %172 = arith.mulf %48, %171 : vector<16x128xf32>
    %173 = arith.mulf %172, %105 : vector<16x128xf32>
    %174 = arith.subf %169, %173 : vector<16x128xf32>
    %c15 = arith.constant 15 : index
    %175 = memref.load %arg1[%c15] : memref<52xf32, #tpu.memory_space<smem>>
    %176 = vector.broadcast %175 : f32 to vector<16x128xf32>
    %177 = arith.mulf %45, %176 : vector<16x128xf32>
    %178 = arith.mulf %177, %105 : vector<16x128xf32>
    %c23 = arith.constant 23 : index
    %179 = memref.load %arg1[%c23] : memref<52xf32, #tpu.memory_space<smem>>
    %180 = vector.broadcast %179 : f32 to vector<16x128xf32>
    %181 = arith.mulf %51, %180 : vector<16x128xf32>
    %182 = arith.mulf %181, %113 : vector<16x128xf32>
    %183 = arith.subf %178, %182 : vector<16x128xf32>
    %c16 = arith.constant 16 : index
    %184 = memref.load %arg1[%c16] : memref<52xf32, #tpu.memory_space<smem>>
    %185 = vector.broadcast %184 : f32 to vector<16x128xf32>
    %186 = arith.mulf %48, %185 : vector<16x128xf32>
    %187 = arith.mulf %186, %113 : vector<16x128xf32>
    %c24 = arith.constant 24 : index
    %188 = memref.load %arg1[%c24] : memref<52xf32, #tpu.memory_space<smem>>
    %189 = vector.broadcast %188 : f32 to vector<16x128xf32>
    %190 = arith.mulf %54, %189 : vector<16x128xf32>
    %191 = arith.mulf %190, %121 : vector<16x128xf32>
    %192 = arith.subf %187, %191 : vector<16x128xf32>
    %c17 = arith.constant 17 : index
    %193 = memref.load %arg1[%c17] : memref<52xf32, #tpu.memory_space<smem>>
    %194 = vector.broadcast %193 : f32 to vector<16x128xf32>
    %195 = arith.mulf %51, %194 : vector<16x128xf32>
    %196 = arith.mulf %195, %121 : vector<16x128xf32>
    %c25 = arith.constant 25 : index
    %197 = memref.load %arg1[%c25] : memref<52xf32, #tpu.memory_space<smem>>
    %198 = vector.broadcast %197 : f32 to vector<16x128xf32>
    %199 = arith.mulf %57, %198 : vector<16x128xf32>
    %200 = arith.mulf %199, %129 : vector<16x128xf32>
    %201 = arith.subf %196, %200 : vector<16x128xf32>
    %c26 = arith.constant 26 : index
    %202 = memref.load %arg1[%c26] : memref<52xf32, #tpu.memory_space<smem>>
    %203 = vector.broadcast %202 : f32 to vector<16x128xf32>
    %204 = arith.mulf %30, %203 : vector<16x128xf32>
    %205 = arith.mulf %204, %138 : vector<16x128xf32>
    %c33 = arith.constant 33 : index
    %206 = memref.load %arg1[%c33] : memref<52xf32, #tpu.memory_space<smem>>
    %207 = vector.broadcast %206 : f32 to vector<16x128xf32>
    %208 = arith.mulf %39, %207 : vector<16x128xf32>
    %209 = arith.mulf %208, %147 : vector<16x128xf32>
    %210 = arith.subf %205, %209 : vector<16x128xf32>
    %c27 = arith.constant 27 : index
    %211 = memref.load %arg1[%c27] : memref<52xf32, #tpu.memory_space<smem>>
    %212 = vector.broadcast %211 : f32 to vector<16x128xf32>
    %213 = arith.mulf %33, %212 : vector<16x128xf32>
    %214 = arith.mulf %213, %147 : vector<16x128xf32>
    %c34 = arith.constant 34 : index
    %215 = memref.load %arg1[%c34] : memref<52xf32, #tpu.memory_space<smem>>
    %216 = vector.broadcast %215 : f32 to vector<16x128xf32>
    %217 = arith.mulf %42, %216 : vector<16x128xf32>
    %218 = arith.mulf %217, %156 : vector<16x128xf32>
    %219 = arith.subf %214, %218 : vector<16x128xf32>
    %c28 = arith.constant 28 : index
    %220 = memref.load %arg1[%c28] : memref<52xf32, #tpu.memory_space<smem>>
    %221 = vector.broadcast %220 : f32 to vector<16x128xf32>
    %222 = arith.mulf %36, %221 : vector<16x128xf32>
    %223 = arith.mulf %222, %156 : vector<16x128xf32>
    %c35 = arith.constant 35 : index
    %224 = memref.load %arg1[%c35] : memref<52xf32, #tpu.memory_space<smem>>
    %225 = vector.broadcast %224 : f32 to vector<16x128xf32>
    %226 = arith.mulf %45, %225 : vector<16x128xf32>
    %227 = arith.mulf %226, %165 : vector<16x128xf32>
    %228 = arith.subf %223, %227 : vector<16x128xf32>
    %c29 = arith.constant 29 : index
    %229 = memref.load %arg1[%c29] : memref<52xf32, #tpu.memory_space<smem>>
    %230 = vector.broadcast %229 : f32 to vector<16x128xf32>
    %231 = arith.mulf %39, %230 : vector<16x128xf32>
    %232 = arith.mulf %231, %165 : vector<16x128xf32>
    %c36 = arith.constant 36 : index
    %233 = memref.load %arg1[%c36] : memref<52xf32, #tpu.memory_space<smem>>
    %234 = vector.broadcast %233 : f32 to vector<16x128xf32>
    %235 = arith.mulf %48, %234 : vector<16x128xf32>
    %236 = arith.mulf %235, %174 : vector<16x128xf32>
    %237 = arith.subf %232, %236 : vector<16x128xf32>
    %c30 = arith.constant 30 : index
    %238 = memref.load %arg1[%c30] : memref<52xf32, #tpu.memory_space<smem>>
    %239 = vector.broadcast %238 : f32 to vector<16x128xf32>
    %240 = arith.mulf %42, %239 : vector<16x128xf32>
    %241 = arith.mulf %240, %174 : vector<16x128xf32>
    %c37 = arith.constant 37 : index
    %242 = memref.load %arg1[%c37] : memref<52xf32, #tpu.memory_space<smem>>
    %243 = vector.broadcast %242 : f32 to vector<16x128xf32>
    %244 = arith.mulf %51, %243 : vector<16x128xf32>
    %245 = arith.mulf %244, %183 : vector<16x128xf32>
    %246 = arith.subf %241, %245 : vector<16x128xf32>
    %c31 = arith.constant 31 : index
    %247 = memref.load %arg1[%c31] : memref<52xf32, #tpu.memory_space<smem>>
    %248 = vector.broadcast %247 : f32 to vector<16x128xf32>
    %249 = arith.mulf %45, %248 : vector<16x128xf32>
    %250 = arith.mulf %249, %183 : vector<16x128xf32>
    %c38 = arith.constant 38 : index
    %251 = memref.load %arg1[%c38] : memref<52xf32, #tpu.memory_space<smem>>
    %252 = vector.broadcast %251 : f32 to vector<16x128xf32>
    %253 = arith.mulf %54, %252 : vector<16x128xf32>
    %254 = arith.mulf %253, %192 : vector<16x128xf32>
    %255 = arith.subf %250, %254 : vector<16x128xf32>
    %c32 = arith.constant 32 : index
    %256 = memref.load %arg1[%c32] : memref<52xf32, #tpu.memory_space<smem>>
    %257 = vector.broadcast %256 : f32 to vector<16x128xf32>
    %258 = arith.mulf %48, %257 : vector<16x128xf32>
    %259 = arith.mulf %258, %192 : vector<16x128xf32>
    %c39 = arith.constant 39 : index
    %260 = memref.load %arg1[%c39] : memref<52xf32, #tpu.memory_space<smem>>
    %261 = vector.broadcast %260 : f32 to vector<16x128xf32>
    %262 = arith.mulf %57, %261 : vector<16x128xf32>
    %263 = arith.mulf %262, %201 : vector<16x128xf32>
    %264 = arith.subf %259, %263 : vector<16x128xf32>
    %c40 = arith.constant 40 : index
    %265 = memref.load %arg1[%c40] : memref<52xf32, #tpu.memory_space<smem>>
    %266 = vector.broadcast %265 : f32 to vector<16x128xf32>
    %267 = arith.mulf %30, %266 : vector<16x128xf32>
    %268 = arith.mulf %267, %210 : vector<16x128xf32>
    %c46 = arith.constant 46 : index
    %269 = memref.load %arg1[%c46] : memref<52xf32, #tpu.memory_space<smem>>
    %270 = vector.broadcast %269 : f32 to vector<16x128xf32>
    %271 = arith.mulf %42, %270 : vector<16x128xf32>
    %272 = arith.mulf %271, %219 : vector<16x128xf32>
    %273 = arith.subf %268, %272 : vector<16x128xf32>
    %c41 = arith.constant 41 : index
    %274 = memref.load %arg1[%c41] : memref<52xf32, #tpu.memory_space<smem>>
    %275 = vector.broadcast %274 : f32 to vector<16x128xf32>
    %276 = arith.mulf %33, %275 : vector<16x128xf32>
    %277 = arith.mulf %276, %219 : vector<16x128xf32>
    %c47 = arith.constant 47 : index
    %278 = memref.load %arg1[%c47] : memref<52xf32, #tpu.memory_space<smem>>
    %279 = vector.broadcast %278 : f32 to vector<16x128xf32>
    %280 = arith.mulf %45, %279 : vector<16x128xf32>
    %281 = arith.mulf %280, %228 : vector<16x128xf32>
    %282 = arith.subf %277, %281 : vector<16x128xf32>
    %c42 = arith.constant 42 : index
    %283 = memref.load %arg1[%c42] : memref<52xf32, #tpu.memory_space<smem>>
    %284 = vector.broadcast %283 : f32 to vector<16x128xf32>
    %285 = arith.mulf %36, %284 : vector<16x128xf32>
    %286 = arith.mulf %285, %228 : vector<16x128xf32>
    %c48 = arith.constant 48 : index
    %287 = memref.load %arg1[%c48] : memref<52xf32, #tpu.memory_space<smem>>
    %288 = vector.broadcast %287 : f32 to vector<16x128xf32>
    %289 = arith.mulf %48, %288 : vector<16x128xf32>
    %290 = arith.mulf %289, %237 : vector<16x128xf32>
    %291 = arith.subf %286, %290 : vector<16x128xf32>
    %c43 = arith.constant 43 : index
    %292 = memref.load %arg1[%c43] : memref<52xf32, #tpu.memory_space<smem>>
    %293 = vector.broadcast %292 : f32 to vector<16x128xf32>
    %294 = arith.mulf %39, %293 : vector<16x128xf32>
    %295 = arith.mulf %294, %237 : vector<16x128xf32>
    %c49 = arith.constant 49 : index
    %296 = memref.load %arg1[%c49] : memref<52xf32, #tpu.memory_space<smem>>
    %297 = vector.broadcast %296 : f32 to vector<16x128xf32>
    %298 = arith.mulf %51, %297 : vector<16x128xf32>
    %299 = arith.mulf %298, %246 : vector<16x128xf32>
    %300 = arith.subf %295, %299 : vector<16x128xf32>
    %c44 = arith.constant 44 : index
    %301 = memref.load %arg1[%c44] : memref<52xf32, #tpu.memory_space<smem>>
    %302 = vector.broadcast %301 : f32 to vector<16x128xf32>
    %303 = arith.mulf %42, %302 : vector<16x128xf32>
    %304 = arith.mulf %303, %246 : vector<16x128xf32>
    %c50 = arith.constant 50 : index
    %305 = memref.load %arg1[%c50] : memref<52xf32, #tpu.memory_space<smem>>
    %306 = vector.broadcast %305 : f32 to vector<16x128xf32>
    %307 = arith.mulf %54, %306 : vector<16x128xf32>
    %308 = arith.mulf %307, %255 : vector<16x128xf32>
    %309 = arith.subf %304, %308 : vector<16x128xf32>
    %c45 = arith.constant 45 : index
    %310 = memref.load %arg1[%c45] : memref<52xf32, #tpu.memory_space<smem>>
    %311 = vector.broadcast %310 : f32 to vector<16x128xf32>
    %312 = arith.mulf %45, %311 : vector<16x128xf32>
    %313 = arith.mulf %312, %255 : vector<16x128xf32>
    %c51 = arith.constant 51 : index
    %314 = memref.load %arg1[%c51] : memref<52xf32, #tpu.memory_space<smem>>
    %315 = vector.broadcast %314 : f32 to vector<16x128xf32>
    %316 = arith.mulf %57, %315 : vector<16x128xf32>
    %317 = arith.mulf %316, %264 : vector<16x128xf32>
    %318 = arith.subf %313, %317 : vector<16x128xf32>
    %319 = vector.extract_strided_slice %26 {offsets = [0, 0], sizes = [1, 128], strides = [1, 1]} : vector<8x128xf32> to vector<1x128xf32>
    %320 = vector.broadcast %319 : vector<1x128xf32> to vector<16x128xf32>
    %321 = arith.mulf %273, %320 : vector<16x128xf32>
    %322 = vector.extract_strided_slice %26 {offsets = [1, 0], sizes = [1, 128], strides = [1, 1]} : vector<8x128xf32> to vector<1x128xf32>
    %323 = vector.broadcast %322 : vector<1x128xf32> to vector<16x128xf32>
    %324 = arith.mulf %282, %323 : vector<16x128xf32>
    %325 = arith.addf %321, %324 : vector<16x128xf32>
    %326 = vector.extract_strided_slice %26 {offsets = [2, 0], sizes = [1, 128], strides = [1, 1]} : vector<8x128xf32> to vector<1x128xf32>
    %327 = vector.broadcast %326 : vector<1x128xf32> to vector<16x128xf32>
    %328 = arith.mulf %291, %327 : vector<16x128xf32>
    %329 = arith.addf %325, %328 : vector<16x128xf32>
    %330 = vector.extract_strided_slice %26 {offsets = [3, 0], sizes = [1, 128], strides = [1, 1]} : vector<8x128xf32> to vector<1x128xf32>
    %331 = vector.broadcast %330 : vector<1x128xf32> to vector<16x128xf32>
    %332 = arith.mulf %300, %331 : vector<16x128xf32>
    %333 = arith.addf %329, %332 : vector<16x128xf32>
    %334 = vector.extract_strided_slice %26 {offsets = [4, 0], sizes = [1, 128], strides = [1, 1]} : vector<8x128xf32> to vector<1x128xf32>
    %335 = vector.broadcast %334 : vector<1x128xf32> to vector<16x128xf32>
    %336 = arith.mulf %309, %335 : vector<16x128xf32>
    %337 = arith.addf %333, %336 : vector<16x128xf32>
    %338 = vector.extract_strided_slice %26 {offsets = [5, 0], sizes = [1, 128], strides = [1, 1]} : vector<8x128xf32> to vector<1x128xf32>
    %339 = vector.broadcast %338 : vector<1x128xf32> to vector<16x128xf32>
    %340 = arith.mulf %318, %339 : vector<16x128xf32>
    %341 = arith.addf %337, %340 : vector<16x128xf32>
    %342 = arith.negf %27 : vector<16x128xf32>
    %343 = math.exp %342 : vector<16x128xf32>
    %cst_62 = arith.constant 1.000000e+00 : f32
    %344 = vector.broadcast %cst_62 : f32 to vector<16x128xf32>
    %345 = arith.addf %344, %343 : vector<16x128xf32>
    %346 = arith.divf %344, %345 : vector<16x128xf32>
    %347 = arith.mulf %27, %346 : vector<16x128xf32>
    %348 = vector.extract_strided_slice %26 {offsets = [6, 0], sizes = [1, 128], strides = [1, 1]} : vector<8x128xf32> to vector<1x128xf32>
    %349 = arith.addf %347, %341 : vector<16x128xf32>
    %350 = vector.broadcast %348 : vector<1x128xf32> to vector<16x128xf32>
    %351 = arith.mulf %350, %349 : vector<16x128xf32>
    %c0_63 = arith.constant 0 : index
    %c0_64 = arith.constant 0 : index
    %352 = vector.load %arg12[%c0_63, %c0_64] : memref<16x128xf32, #tpu.memory_space<vmem>>, vector<16x128xf32>
    tpu.vector_store %arg12[%c0_63, %c0_64], %351 {strides = array<i32>} : memref<16x128xf32, #tpu.memory_space<vmem>>, vector<16x128xf32>,
    return
  }
  func.func @transform_0(%arg0: i32) -> i32 {
    %c0_i32 = arith.constant 0 : i32
    %c0_i32_0 = arith.constant 0 : i32
    return %c0_i32 : i32
  }
  func.func @transform_1(%arg0: i32) -> (i32, i32) {
    %c0_i32 = arith.constant 0 : i32
    %c0_i32_0 = arith.constant 0 : i32
    return %c0_i32, %arg0 : i32, i32
  }
  func.func @transform_2(%arg0: i32) -> (i32, i32) {
    %c0_i32 = arith.constant 0 : i32
    %c0_i32_0 = arith.constant 0 : i32
    return %c0_i32, %arg0 : i32, i32
  }
  func.func @transform_3(%arg0: i32) -> (i32, i32) {
    %c0_i32 = arith.constant 0 : i32
    %c0_i32_0 = arith.constant 0 : i32
    %c0_i32_1 = arith.constant 0 : i32
    return %c0_i32, %c0_i32_0 : i32, i32
  }
  func.func @transform_4(%arg0: i32) -> (i32, i32) {
    %c0_i32 = arith.constant 0 : i32
    %c0_i32_0 = arith.constant 0 : i32
    %c0_i32_1 = arith.constant 0 : i32
    return %c0_i32, %c0_i32_0 : i32, i32
  }
  func.func @transform_5(%arg0: i32) -> (i32, i32) {
    %c0_i32 = arith.constant 0 : i32
    %c0_i32_0 = arith.constant 0 : i32
    %c0_i32_1 = arith.constant 0 : i32
    return %c0_i32, %c0_i32_0 : i32, i32
  }
  func.func @transform_6(%arg0: i32) -> (i32, i32) {
    %c0_i32 = arith.constant 0 : i32
    %c0_i32_0 = arith.constant 0 : i32
    %c0_i32_1 = arith.constant 0 : i32
    return %c0_i32, %c0_i32_0 : i32, i32
  }
  func.func @transform_7(%arg0: i32) -> (i32, i32) {
    %c0_i32 = arith.constant 0 : i32
    %c0_i32_0 = arith.constant 0 : i32
    %c0_i32_1 = arith.constant 0 : i32
    return %c0_i32, %c0_i32_0 : i32, i32
  }
  func.func @transform_8(%arg0: i32) -> (i32, i32) {
    %c0_i32 = arith.constant 0 : i32
    %c0_i32_0 = arith.constant 0 : i32
    %c0_i32_1 = arith.constant 0 : i32
    return %c0_i32, %c0_i32_0 : i32, i32
  }
  func.func @transform_9(%arg0: i32) -> (i32, i32) {
    %c0_i32 = arith.constant 0 : i32
    %c0_i32_0 = arith.constant 0 : i32
    %c0_i32_1 = arith.constant 0 : i32
    return %c0_i32, %c0_i32_0 : i32, i32
  }
  func.func @transform_10(%arg0: i32) -> (i32, i32) {
    %c0_i32 = arith.constant 0 : i32
    %c0_i32_0 = arith.constant 0 : i32
    %c0_i32_1 = arith.constant 0 : i32
    return %c0_i32, %c0_i32_0 : i32, i32
  }
  func.func @transform_11(%arg0: i32) -> (i32, i32) {
    %c0_i32 = arith.constant 0 : i32
    %c0_i32_0 = arith.constant 0 : i32
    return %c0_i32, %arg0 : i32, i32
  }
}

</mosaic_0001>

<bundles_post_ra>
// kernel: tpu_custom_call.1
= control target key start
LH: loop header
LB: loop body
LE: loop exit
PB: predicated region body
PF: predicated region fallthrough
CT: control target
= control target key end

     0   :  { %s3549_s0 = inlined_call_operand.vmem [shape: f32[52], index: 0, kind: input, shape index: {}]   ;;  %s3550_s1 = inlined_call_operand.vmem [shape: f32[68,384], index: 1, kind: input, shape index: {}]   ;;  %s3551_s2 = inlined_call_operand.vmem [shape: f32[16,384], index: 2, kind: input, shape index: {}]   ;;  %s3552_s3 = inlined_call_operand.vmem [shape: f32[128,68], index: 3, kind: input, shape index: {}]   ;;  %s3553_s4 = inlined_call_operand.vmem [shape: f32[128,1], index: 4, kind: input, shape index: {}]   ;;  %s3554_s5 = inlined_call_operand.vmem [shape: f32[128,128], index: 5, kind: input, shape index: {}]   ;;  %s3555_s6 = inlined_call_operand.vmem [shape: f32[128,1], index: 6, kind: input, shape index: {}]   ;;  %s3556_s7 = inlined_call_operand.vmem [shape: f32[256,128], index: 7, kind: input, shape index: {}]   ;;  %s3557_s8 = inlined_call_operand.vmem [shape: f32[256,1], index: 8, kind: input, shape index: {}]   ;;  %s3558_s9 = inlined_call_operand.vmem [shape: f32[8,256], index: 9, kind: input, shape index: {}]   ;;  %s3559_s10 = inlined_call_operand.vmem [shape: f32[8,1], index: 10, kind: input, shape index: {}]   ;;  %s3560_s11 = inlined_call_operand.hbm [shape: f32[16,384], index: 11, kind: output, shape index: {}]  }
   0x1   :  { %3562 = sst [smem:[#allocation13_spill]] %s3549_s0 }
   0x2   :  { %3563 = sst [smem:[#allocation14_spill]] %s3550_s1 }
   0x3   :  { %16 = vsyncpa [#allocation4], 0 }
   0x4   :  { %17 = vsyncpa [#allocation3], 0 }
   0x5   :  { %19 = vsyncpa [#allocation3 + $0x1], 0  ;;  %s2304_s17 = smov 0   ;;  %s2306_s18 = smov 0  }
   0x6   :  { %s2308_s19 = smov 0   ;;  %s2310_s20 = smov 0  }
   0x7 LB: > { %s2325_s21 = sadd.s32 4294967295, %s2236_s20   ;;  %s1986_s22 = sadd.s32 4294967294, %s2236_s20   ;;  %s2236_s20 = sphi %s2310_s20, %s3608_s20   ;;  %s2232_s19 = sphi %s2308_s19, %s3607_s19   ;;  %s2228_s18 = sphi %s2306_s18, %s3606_s18   ;;  %s2224_s17 = sphi %s2304_s17, %s3605_s17  }
   0x8   : > { %s2329_s23 = sadd.s32 1, %s2236_s20   ;;  %s53_s24 = sadd.s32 1, %s2232_s19 }
   0x9   : > { %s50_s25 = ssub.s32 %s2236_s20, %s2329_s23  ;;  %p60_p0 = scmp.ne.s32.totalorder %s2232_s19, %s2228_s18 }
   0xa   : > { %p51_p1 = scmp.eq.s32.totalorder %s50_s25, 0  ;;  %p61_p2 = scmp.eq.s32.totalorder %s2236_s20, 0 }
   0xb   : > { %p284_p3 = scmp.eq.s32.totalorder %s2325_s21, 2  ;;  %p289_p4 = scmp.ne.s32.totalorder %s2228_s18, %s2224_s17 }
   0xc   : > { %s2341_s26 = scalar_select %p51_p1, %s2232_s19, %s53_s24  }
   0xd   : > { %p2343_p5 = por %p61_p2, %p60_p0  ;;  %p2347_p6 = por %p284_p3, %p60_p0 }
   0xe   : > { %p290_p7 = scmp.eq.s32.totalorder %s1986_s22, 2  ;;  %p1987_p8 = scmp.ge.s32.totalorder %s2236_s20, 1 }
   0xf   : > { %p297_p9 = scmp.lt.s32.totalorder %s2236_s20, 4  ;;  %p2103_p11 = scmp.eq.s32.totalorder %s2325_s21, 0 }
  0x10   : > { %p2353_p10 = por %p290_p7, %p289_p4  ;;  %s3568_s0 = sld [smem:[#allocation13_spill]] }
  0x11   : > { %p2358_p12 = pnand %p1987_p8, %p297_p9  ;;  %s2238_s15 = smov [#allocation2]  }
  0x12   : > { %p1989_p1 = scmp.ge.s32.totalorder %s2236_s20, 3 }
  0x13   : > { %p2095_p13 = pneg %p2358_p12 }
  0x14   : > { %340 = sbr.rel (%p1989_p1) target bundleno = 50 (0x32), region = 52 }
  0x15   : > { %p2096_p0 = pnand %p2103_p11, %p2095_p13 }
  0x16   : > { %s309_s14 = sshll.u32 %s3568_s0, 4  ;;  %s310_s14 = int_to_ptr.vmem [resolvable:$true] %s309_s14 }
  0x17   : > { %2098 = dma.vmem_to_smem (!%p2096_p0), %s310_s14, 16, %s2238_s15, [#allocation4]  }
  0x19   : > { %343 = sbr.rel (!%p2343_p5) target bundleno = 44 (0x2c), region = 56  ;;  %s345_s16 = sand.u32 (%p2343_p5), 1, %s2232_s19  }
  0x1a   : > { %s1990_s22 = sshll.u32 (%p2343_p5), %s2236_s20, 3  ;;  %s2087_s24 = smul.u32 (%p2343_p5), 72, %s345_s16 }
  0x1b   : > { %s3569_s1 = sld [smem:[#allocation14_spill]] (%p2343_p5) }
  0x1c   : > { %s347_s0 = scalar_lea.vmem (%p2343_p5), [#allocation5], %s2087_s24 }
  0x21   : > { %s349_s13 = scalar_lea.vmem %s3569_s1, %s1990_s22 }
  0x22   : > { %v394_v0 = vld [vmem:[%s349_s13] sm:$0xff]  ;;  %v396_v1 = vld [vmem:[%s349_s13 + $0x18] sm:$0xff]  ;;  %v398_v2 = vld [vmem:[%s349_s13 + $0x30] sm:$0xff] }
  0x23   : > { %395 = vst [vmem:[%s347_s0] sm:$0xff] %v394_v0  ;;  %v400_v3 = vld [vmem:[%s349_s13 + $0x48] sm:$0xff]  ;;  %v402_v4 = vld [vmem:[%s349_s13 + $0x60] sm:$0xff]  ;;  %v404_v5 = vld [vmem:[%s349_s13 + $0x78] sm:$0xff] }
  0x24   : > { %397 = vst [vmem:[%s347_s0 + $0x8] sm:$0xff] %v396_v1  ;;  %v406_v6 = vld [vmem:[%s349_s13 + $0x90] sm:$0xff]  ;;  %v408_v7 = vld [vmem:[%s349_s13 + $0xa8] sm:$0xff]  ;;  %v410_v8 = vld [vmem:[%s349_s13 + $0xc0] sm:$0xff] }
  0x25   : > { %399 = vst [vmem:[%s347_s0 + $0x10] sm:$0xff] %v398_v2 }
  0x26   : > { %401 = vst [vmem:[%s347_s0 + $0x18] sm:$0xff] %v400_v3 }
  0x27   : > { %403 = vst [vmem:[%s347_s0 + $0x20] sm:$0xff] %v402_v4 }
  0x28   : > { %405 = vst [vmem:[%s347_s0 + $0x28] sm:$0xff] %v404_v5 }
  0x29   : > { %407 = vst [vmem:[%s347_s0 + $0x30] sm:$0xff] %v406_v6 }
  0x2a   : > { %409 = vst [vmem:[%s347_s0 + $0x38] sm:$0xff] %v408_v7 }
  0x2b   : > { %411 = vst [vmem:[%s347_s0 + $0x40] sm:$0xff] %v410_v8 }
  0x2c PF: > { %417 = sbr.rel (!%p2343_p5) target bundleno = 50 (0x32), region = 94  ;;  %s419_s14 = sand.u32 (%p2343_p5), 1, %s2232_s19  }
  0x2d   : > { %s1992_s15 = sshll.u32 (%p2343_p5), %s2236_s20, 3  ;;  %s1991_s16 = sshll.u32 (%p2343_p5), %s419_s14, 4 }
  0x2e   : > { %s423_s25 = scalar_lea.vmem (%p2343_p5), %s3551_s2, %s1992_s15  ;;  %s421_s12 = scalar_lea.vmem (%p2343_p5), [#allocation6], %s1991_s16 }
  0x2f   : > { %v454_v9 = vld [vmem:[%s423_s25] sm:$0xff] (%p2343_p5)  ;;  %v456_v10 = vld [vmem:[%s423_s25 + $0x18] sm:$0xff] (%p2343_p5) }
  0x30   : > { %455 = vst [vmem:[%s421_s12] sm:$0xff] (%p2343_p5), %v454_v9 }
  0x31   : > { %457 = vst [vmem:[%s421_s12 + $0x8] sm:$0xff] %v456_v10 }
  0x32 PF: > { %466 = sbr.rel (%p2358_p12) target bundleno = 1111 (0x457), region = 132 }
  0x37   : > { %2215 = dma.done.wait (%p2103_p11), [#allocation4], 16  }
  0x38   : > { %2217 = vsyncadd (%p2103_p11), [#allocation4], 4294967280  ;;  %s2391_s0 = sand.u32 1, %s2228_s18  }
  0x39   : > { %s2088_s27 = smul.u32 72, %s2391_s0  ;;  %s3561_s13 = sshll.u32 %s2391_s0, 4 }
  0x3a   : > { %s2399_s15 = scalar_lea.vmem [#allocation6], %s3561_s13 }
  0x3b   : > { %s2395_s14 = scalar_lea.vmem [#allocation5], %s2088_s27 }
  0x3c   : > { %487 = sfence }
  0x3d   : > { %v533_v11 = vld [vmem:[%s2395_s14 + $0x40] sm:$0xf]  ;;  %vm695_vm0 = vcmask 1043456   ;;  %v565_v12 = vld [vmem:[%s3553_s4 + $0x78] sm:$0xff]  ;;  %v2239_v14 = vmov 0   ;;  %v530_v18 = vld [vmem:[%s2395_s14 + $0x28] sm:$0xff] }
  0x3e   : > { %v563_v13 = vld [vmem:[%s3553_s4 + $0x68] sm:$0xff]  ;;  %2145 = vset.pattern.permute.xlu1 %v2239_v14  ;;  %2144 = vset.pattern.permute.xlu0 %v2239_v14  ;;  %v532_v15 = vld [vmem:[%s2395_s14 + $0x38] sm:$0xff]  ;;  %v531_v17 = vld [vmem:[%s2395_s14 + $0x30] sm:$0xff]  ;;  %vm646_vm1 = vcmask 556032   ;;  %s1392_s1 = sld [smem:[#allocation2]] }
  0x3f   : > { %1997 = vmatpush.msk.msra.mxu0 %vm695_vm0, %v533_v11  ;;  %643 = vperm.xlu0 %2144, %v565_v12   ;;  %v561_v16 = vld [vmem:[%s3553_s4 + $0x58] sm:$0xff]  ;;  %v529_v19 = vld [vmem:[%s2395_s14 + $0x20] sm:$0xff]  ;;  %v564_v20 = vld [vmem:[%s3553_s4 + $0x70] sm:$0xff]  ;;  %s2014_s25 = sld [smem:[#allocation2 + $0x1]] }
  0x40   : > { %633 = vperm.xlu1 %2145, %v563_v13   ;;  %2146 = vset.pattern.permute.xlu2 %v2239_v14  ;;  %v562_v21 = vld [vmem:[%s3553_s4 + $0x60] sm:$0xff]  ;;  %v560_v23 = vld [vmem:[%s3553_s4 + $0x50] sm:$0xff]  ;;  %v559_v27 = vld [vmem:[%s3553_s4 + $0x48] sm:$0xff]  ;;  %s2016_s12 = sld [smem:[#allocation2 + $0x3]] }
  0x41   : > { %707 = vmatpush.msra.mxu0 %v532_v15  ;;  %623 = vperm.xlu2 %2146, %v561_v16   ;;  %v528_v22 = vld [vmem:[%s2395_s14 + $0x18] sm:$0xff]  ;;  %v527_v24 = vld [vmem:[%s2395_s14 + $0x10] sm:$0xff]  ;;  %v526_v25 = vld [vmem:[%s2395_s14 + $0x8] sm:$0xff]  ;;  %s2900_s27 = sld [smem:[#allocation2 + $0x4]] }
  0x42   : > { %v525_v26 = vld [vmem:[%s2395_s14] sm:$0xff]  ;;  %v557_v30 = vld [vmem:[%s3553_s4 + $0x38] sm:$0xff]  ;;  %v556_v31 = vld [vmem:[%s3553_s4 + $0x30] sm:$0xff]  ;;  %s2015_s14 = sld [smem:[#allocation2 + $0x2]] }
  0x43   : > { %708 = vmatpush.msra.mxu0 %v531_v17  ;;  %v558_v28 = vld [vmem:[%s3553_s4 + $0x40] sm:$0xff]  ;;  %v555_v32 = vld [vmem:[%s3553_s4 + $0x28] sm:$0xff]  ;;  %v553_v35 = vld [vmem:[%s3553_s4 + $0x18] sm:$0xff]  ;;  %s2908_s30 = sld [smem:[#allocation2 + $0x5]] }
  0x44   : > { %v534_v29 = vld [vmem:[%s3552_s3] sm:$0xff]  ;;  %v535_v33 = vld [vmem:[%s3552_s3 + $0x8] sm:$0xff]  ;;  %v552_v36 = vld [vmem:[%s3553_s4 + $0x10] sm:$0xff]  ;;  %s2910_s16 = sld [smem:[#allocation2 + $0x6]] }
  0x45   : > { %709 = vmatpush.msra.mxu0 %v530_v18  ;;  %v554_v34 = vld [vmem:[%s3553_s4 + $0x20] sm:$0xff]  ;;  %v536_v37 = vld [vmem:[%s3552_s3 + $0x10] sm:$0xff]  ;;  %v551_v38 = vld [vmem:[%s3553_s4 + $0x8] sm:$0xff]  ;;  %s2918_s22 = sld [smem:[#allocation2 + $0x7]] }
  0x46   : > { %v550_v39 = vld [vmem:[%s3553_s4] sm:$0xff]  ;;  %v811_v40 = vld [vmem:[%s3555_s6 + $0x78] sm:$0xff]  ;;  %v810_v42 = vld [vmem:[%s3555_s6 + $0x70] sm:$0xff]  ;;  %s2968_s13 = sld [smem:[#allocation2 + $0x12]] }
  0x47   : > { %710 = vmatpush.msra.mxu0 %v529_v19  ;;  %638 = vperm.xlu0 %2144, %v564_v20   ;;  %v537_v41 = vld [vmem:[%s3552_s3 + $0x18] sm:$0xff]  ;;  %v809_v43 = vld [vmem:[%s3555_s6 + $0x68] sm:$0xff]  ;;  %v808_v44 = vld [vmem:[%s3555_s6 + $0x60] sm:$0xff]  ;;  %s2979_s24 = sld [smem:[#allocation2 + $0xb]] }
  0x48   : > { %628 = vperm.xlu1 %2145, %v562_v21   ;;  %v538_v45 = vld [vmem:[%s3552_s3 + $0x20] sm:$0xff]  ;;  %v807_v46 = vld [vmem:[%s3555_s6 + $0x58] sm:$0xff]  ;;  %v806_v47 = vld [vmem:[%s3555_s6 + $0x50] sm:$0xff] }
  0x49   : > { %711 = vmatpush.msra.mxu0 %v528_v22  ;;  %618 = vperm.xlu2 %2146, %v560_v23   ;;  %v805_v48 = vld [vmem:[%s3555_s6 + $0x48] sm:$0xff]  ;;  %v804_v50 = vld [vmem:[%s3555_s6 + $0x40] sm:$0xff]  ;;  %v803_v51 = vld [vmem:[%s3555_s6 + $0x38] sm:$0xff] }
  0x4a   : > { %v539_v49 = vld [vmem:[%s3552_s3 + $0x28] sm:$0xff]  ;;  %v802_v52 = vld [vmem:[%s3555_s6 + $0x30] sm:$0xff]  ;;  %v800_v55 = vld [vmem:[%s3555_s6 + $0x20] sm:$0xff] }
  0x4b   : > { %712 = vmatpush.msra.mxu0 %v527_v24  ;;  %v540_v53 = vld [vmem:[%s3552_s3 + $0x30] sm:$0xff]  ;;  %v801_v54 = vld [vmem:[%s3555_s6 + $0x28] sm:$0xff]  ;;  %v799_v56 = vld [vmem:[%s3555_s6 + $0x18] sm:$0xff] }
  0x4c   : > { %v541_v57 = vld [vmem:[%s3552_s3 + $0x38] sm:$0xff]  ;;  %v798_v58 = vld [vmem:[%s3555_s6 + $0x10] sm:$0xff]  ;;  %v797_v59 = vld [vmem:[%s3555_s6 + $0x8] sm:$0xff] }
  0x4d   : > { %713 = vmatpush.msra.mxu0 %v526_v25  ;;  %v796_v60 = vld [vmem:[%s3555_s6] sm:$0xff]  ;;  %v1036_v62 = vld [vmem:[%s3557_s8 + $0xf8] sm:$0xff]  ;;  %v1035_v63 = vld [vmem:[%s3557_s8 + $0xf0] sm:$0xff] }
  0x4e   : > { %v542_v61 = vld [vmem:[%s3552_s3 + $0x40] sm:$0xff]  ;;  %v1020_v0 = vld [vmem:[%s3557_s8 + $0x78] sm:$0xff]  ;;  %v543_v1 = vld [vmem:[%s3552_s3 + $0x48] sm:$0xff] }
  0x4f   : > { %714 = vmatpush.msra.mxu0 %v525_v26  ;;  %613 = vperm.xlu0 %2144, %v559_v27   ;;  %v1034_v2 = vld [vmem:[%s3557_s8 + $0xe8] sm:$0xff]  ;;  %v1019_v3 = vld [vmem:[%s3557_s8 + $0x70] sm:$0xff]  ;;  %v1033_v4 = vld [vmem:[%s3557_s8 + $0xe0] sm:$0xff] }
  0x50   : > { %608 = vperm.xlu1 %2145, %v558_v28   ;;  %1998 = vmatmul.msk.f32.vlgmr.msra.gmra.mxu0 %vm646_vm1, %v534_v29  ;;  %v544_v5 = vld [vmem:[%s3552_s3 + $0x50] sm:$0xff]  ;;  %v1018_v6 = vld [vmem:[%s3557_s8 + $0x68] sm:$0xff]  ;;  %v1032_v7 = vld [vmem:[%s3557_s8 + $0xd8] sm:$0xff] }
  0x51   : > { %603 = vperm.xlu2 %2146, %v557_v30   ;;  %v1017_v8 = vld [vmem:[%s3557_s8 + $0x60] sm:$0xff]  ;;  %v545_v9 = vld [vmem:[%s3552_s3 + $0x58] sm:$0xff]  ;;  %v1031_v10 = vld [vmem:[%s3557_s8 + $0xd0] sm:$0xff] }
  0x52   : > { %v1016_v11 = vld [vmem:[%s3557_s8 + $0x58] sm:$0xff]  ;;  %v1030_v12 = vld [vmem:[%s3557_s8 + $0xc8] sm:$0xff]  ;;  %v546_v13 = vld [vmem:[%s3552_s3 + $0x60] sm:$0xff] }
  0x53   : > { %v1015_v14 = vld [vmem:[%s3557_s8 + $0x50] sm:$0xff]  ;;  %v1029_v15 = vld [vmem:[%s3557_s8 + $0xc0] sm:$0xff]  ;;  %v1014_v16 = vld [vmem:[%s3557_s8 + $0x48] sm:$0xff] }
  0x54   : > { %v547_v17 = vld [vmem:[%s3552_s3 + $0x68] sm:$0xff]  ;;  %v1028_v18 = vld [vmem:[%s3557_s8 + $0xb8] sm:$0xff]  ;;  %v1013_v19 = vld [vmem:[%s3557_s8 + $0x40] sm:$0xff] }
  0x55   : > { %v1027_v20 = vld [vmem:[%s3557_s8 + $0xb0] sm:$0xff]  ;;  %v1012_v22 = vld [vmem:[%s3557_s8 + $0x38] sm:$0xff]  ;;  %v1026_v23 = vld [vmem:[%s3557_s8 + $0xa8] sm:$0xff] }
  0x56   : > { %v548_v21 = vld [vmem:[%s3552_s3 + $0x70] sm:$0xff]  ;;  %v549_v25 = vld [vmem:[%s3552_s3 + $0x78] sm:$0xff]  ;;  %v1025_v26 = vld [vmem:[%s3557_s8 + $0xa0] sm:$0xff] }
  0x57   : > { %598 = vperm.xlu0 %2144, %v556_v31   ;;  %v1011_v24 = vld [vmem:[%s3557_s8 + $0x30] sm:$0xff]  ;;  %v1010_v27 = vld [vmem:[%s3557_s8 + $0x28] sm:$0xff]  ;;  %v1024_v29 = vld [vmem:[%s3557_s8 + $0x98] sm:$0xff] }
  0x58   : > { %593 = vperm.xlu1 %2145, %v555_v32   ;;  %1999 = vmatmul.msk.f32.gmra.mxu0 %vm646_vm1, %v535_v33  ;;  %v1009_v30 = vld [vmem:[%s3557_s8 + $0x20] sm:$0xff]  ;;  %v1023_v31 = vld [vmem:[%s3557_s8 + $0x90] sm:$0xff]  ;;  %v1008_v33 = vld [vmem:[%s3557_s8 + $0x18] sm:$0xff] }
  0x59   : > { %588 = vperm.xlu2 %2146, %v554_v34   ;;  %v1022_v34 = vld [vmem:[%s3557_s8 + $0x88] sm:$0xff] }
  0x5f   : > { %583 = vperm.xlu0 %2144, %v553_v35   ;;  %v1007_v35 = vld [vmem:[%s3557_s8 + $0x10] sm:$0xff] }
  0x60   : > { %578 = vperm.xlu1 %2145, %v552_v36   ;;  %2000 = vmatmul.msk.f32.gmra.mxu0 %vm646_vm1, %v536_v37  ;;  %v1021_v37 = vld [vmem:[%s3557_s8 + $0x80] sm:$0xff] }
  0x61   : > { %573 = vperm.xlu2 %2146, %v551_v38   ;;  %v1006_v38 = vld [vmem:[%s3557_s8 + $0x8] sm:$0xff] }
  0x67   : > { %568 = vperm.xlu0 %2144, %v550_v39   ;;  %v1005_v39 = vld [vmem:[%s3557_s8] sm:$0xff] }
  0x68   : > { %889 = vperm.xlu1 %2145, %v811_v40   ;;  %2001 = vmatmul.msk.f32.gmra.mxu0 %vm646_vm1, %v537_v41  ;;  %v1344_v41 = vld [vmem:[%s3559_s10] sm:$0xff] }
  0x69   : > { %884 = vperm.xlu2 %2146, %v810_v42  }
  0x6f   : > { %879 = vperm.xlu0 %2144, %v809_v43  }
  0x70   : > { %874 = vperm.xlu1 %2145, %v808_v44   ;;  %2002 = vmatmul.msk.f32.gmra.mxu0 %vm646_vm1, %v538_v45 }
  0x71   : > { %869 = vperm.xlu2 %2146, %v807_v46  }
  0x77   : > { %864 = vperm.xlu0 %2144, %v806_v47  }
  0x78   : > { %859 = vperm.xlu1 %2145, %v805_v48   ;;  %2003 = vmatmul.msk.f32.gmra.mxu0 %vm646_vm1, %v539_v49 }
  0x79   : > { %854 = vperm.xlu2 %2146, %v804_v50  }
  0x7f   : > { %849 = vperm.xlu0 %2144, %v803_v51  }
  0x80   : > { %844 = vperm.xlu1 %2145, %v802_v52   ;;  %2004 = vmatmul.msk.f32.gmra.mxu0 %vm646_vm1, %v540_v53 }
  0x81   : > { %839 = vperm.xlu2 %2146, %v801_v54  }
  0x87   : > { %834 = vperm.xlu0 %2144, %v800_v55  }
  0x88   : > { %829 = vperm.xlu1 %2145, %v799_v56   ;;  %2005 = vmatmul.msk.f32.gmra.mxu0 %vm646_vm1, %v541_v57 }
  0x89   : > { %824 = vperm.xlu2 %2146, %v798_v58  }
  0x8f   : > { %819 = vperm.xlu0 %2144, %v797_v59  }
  0x90   : > { %814 = vperm.xlu1 %2145, %v796_v60   ;;  %2006 = vmatmul.msk.f32.gmra.mxu0 %vm646_vm1, %v542_v61 }
  0x91   : > { %1194 = vperm.xlu2 %2146, %v1036_v62  }
  0x97   : > { %1189 = vperm.xlu0 %2144, %v1035_v63  }
  0x98   : > { %1114 = vperm.xlu1 %2145, %v1020_v0   ;;  %2007 = vmatmul.msk.f32.gmra.mxu0 %vm646_vm1, %v543_v1 }
  0x99   : > { %1184 = vperm.xlu2 %2146, %v1034_v2  }
  0x9b   : > { %v624_v54 = vpop.permute.xlu2 %623 }
  0x9f   : > { %1109 = vperm.xlu0 %2144, %v1019_v3  }
  0xa0   : > { %1179 = vperm.xlu1 %2145, %v1033_v4   ;;  %2008 = vmatmul.msk.f32.gmra.mxu0 %vm646_vm1, %v544_v5 }
  0xa1   : > { %1104 = vperm.xlu2 %2146, %v1018_v6  }
  0xa3   : > { %v619_v58 = vpop.permute.xlu2 %618 }
  0xa7   : > { %1174 = vperm.xlu0 %2144, %v1032_v7  }
  0xa8   : > { %1099 = vperm.xlu1 %2145, %v1017_v8   ;;  %2009 = vmatmul.msk.f32.gmra.mxu0 %vm646_vm1, %v545_v9 }
  0xa9   : > { %1169 = vperm.xlu2 %2146, %v1031_v10  }
  0xab   : > { %v604_v4 = vpop.permute.xlu2 %603 }
  0xaf   : > { %1094 = vperm.xlu0 %2144, %v1016_v11  }
  0xb0   : > { %1164 = vperm.xlu1 %2145, %v1030_v12   ;;  %2010 = vmatmul.msk.f32.gmra.mxu0 %vm646_vm1, %v546_v13 }
  0xb1   : > { %1089 = vperm.xlu2 %2146, %v1015_v14   ;;  %v644_v50 = vpop.permute.xlu0 %643 }
  0xb2   : > { %v634_v52 = vpop.permute.xlu1 %633 }
  0xb7   : > { %1159 = vperm.xlu0 %2144, %v1029_v15  }
  0xb8   : > { %1084 = vperm.xlu1 %2145, %v1014_v16   ;;  %2011 = vmatmul.msk.f32.gmra.mxu0 %vm646_vm1, %v547_v17  ;;  %v589_v17 = vpop.permute.xlu2 %588 }
  0xb9   : > { %1154 = vperm.xlu2 %2146, %v1028_v18   ;;  %v639_v55 = vpop.permute.xlu0 %638 }
  0xba   : > { %v629_v57 = vpop.permute.xlu1 %628 }
  0xbf   : > { %1079 = vperm.xlu0 %2144, %v1013_v19  }
  0xc0   : > { %1149 = vperm.xlu1 %2145, %v1027_v20   ;;  %2012 = vmatmul.msk.f32.gmra.mxu0 %vm646_vm1, %v548_v21 }
  0xc1   : > { %1074 = vperm.xlu2 %2146, %v1012_v22   ;;  %v614_v59 = vpop.permute.xlu0 %613 }
  0xc2   : > { %v609_v1 = vpop.permute.xlu1 %608 }
  0xc7   : > { %1144 = vperm.xlu0 %2144, %v1026_v23  }
  0xc8   : > { %1069 = vperm.xlu1 %2145, %v1011_v24   ;;  %2013 = vmatmul.msk.f32.gmra.mxu0 %vm646_vm1, %v549_v25 }
  0xc9   : > { %1139 = vperm.xlu2 %2146, %v1025_v26   ;;  %v599_v5 = vpop.permute.xlu0 %598 }
  0xca   : > { %v594_v14 = vpop.permute.xlu1 %593 }
  0xcd   : > { %v2639_v28 = vpop.f32.mrf.mxu0 }
  0xcf   : > { %1064 = vperm.xlu0 %2144, %v1010_v27  }
  0xd0   : > { %1134 = vperm.xlu1 %2145, %v1024_v29  }
  0xd1   : > { %1059 = vperm.xlu2 %2146, %v1009_v30   ;;  %v584_v18 = vpop.permute.xlu0 %583 }
  0xd2   : > { %v579_v27 = vpop.permute.xlu1 %578 }
  0xd5   : > { %v2650_v32 = vpop.f32.mrf.mxu0 }
  0xd7   : > { %1129 = vperm.xlu0 %2144, %v1023_v31   ;;  %v574_v31 = vpop.permute.xlu2 %573 }
  0xd8   : > { %1054 = vperm.xlu1 %2145, %v1008_v33  }
  0xd9   : > { %1124 = vperm.xlu2 %2146, %v1022_v34   ;;  %v569_v33 = vpop.permute.xlu0 %568  ;;  %v720_v34 = vadd.f32 %v2650_v32, %v574_v31  ;;  %v781_v32 = vld [vmem:[%s3554_s5 + $0x8] sm:$0xff] }
  0xdd   : > { %v2661_v36 = vpop.f32.mrf.mxu0 }
  0xde   : > { %v723_v29 = vadd.f32 %v2661_v36, %v579_v27  ;;  %v780_v36 = vld [vmem:[%s3554_s5] sm:$0xff] }
  0xdf   : > { %1049 = vperm.xlu0 %2144, %v1007_v35  }
  0xe0   : > { %1119 = vperm.xlu1 %2145, %v1021_v37   ;;  %v717_v37 = vadd.f32 %v2639_v28, %v569_v33  ;;  %v782_v28 = vld [vmem:[%s3554_s5 + $0x10] sm:$0xff] }
  0xe1   : > { %1044 = vperm.xlu2 %2146, %v1006_v38   ;;  %v766_v38 = vmax.f32 %v723_v29, 0.0 }
  0xe5   : > { %v725_v40 = vpop.f32.mrf.mxu0 }
  0xe6   : > { %v726_v25 = vadd.f32 %v725_v40, %v584_v18  ;;  %v764_v40 = vmax.f32 %v717_v37, 0.0 }
  0xe7   : > { %1039 = vperm.xlu0 %2144, %v1005_v39   ;;  %v765_v39 = vmax.f32 %v720_v34, 0.0 }
  0xe8   : > { %1347 = vperm.xlu1 %2145, %v1344_v41   ;;  %v767_v35 = vmax.f32 %v726_v25, 0.0  ;;  %v783_v41 = vld [vmem:[%s3554_s5 + $0x18] sm:$0xff] }
  0xed   : > { %v728_v42 = vpop.f32.mrf.mxu0 }
  0xee   : > { %v729_v23 = vadd.f32 %v728_v42, %v589_v17  ;;  %v784_v42 = vld [vmem:[%s3554_s5 + $0x20] sm:$0xff] }
  0xf0   : > { %v768_v30 = vmax.f32 %v729_v23, 0.0 }
  0xf5   : > { %v731_v43 = vpop.f32.mrf.mxu0 }
  0xf6   : > { %v732_v21 = vadd.f32 %v731_v43, %v594_v14  ;;  %v785_v43 = vld [vmem:[%s3554_s5 + $0x28] sm:$0xff] }
  0xf8   : > { %v769_v26 = vmax.f32 %v732_v21, 0.0 }
  0xfd   : > { %v734_v44 = vpop.f32.mrf.mxu0 }
  0xfe   : > { %v735_v19 = vadd.f32 %v734_v44, %v599_v5  ;;  %v786_v44 = vld [vmem:[%s3554_s5 + $0x30] sm:$0xff] }
 0x100   : > { %v770_v24 = vmax.f32 %v735_v19, 0.0 }
 0x105   : > { %v737_v45 = vpop.f32.mrf.mxu0 }
 0x106   : > { %v738_v15 = vadd.f32 %v737_v45, %v604_v4  ;;  %v787_v45 = vld [vmem:[%s3554_s5 + $0x38] sm:$0xff]  ;;  %v885_v4 = vpop.permute.xlu2 %884 }
 0x108   : > { %v771_v22 = vmax.f32 %v738_v15, 0.0 }
 0x10d   : > { %v740_v46 = vpop.f32.mrf.mxu0 }
 0x10e   : > { %v741_v12 = vadd.f32 %v740_v46, %v609_v1  ;;  %v788_v46 = vld [vmem:[%s3554_s5 + $0x40] sm:$0xff] }
 0x110   : > { %v772_v20 = vmax.f32 %v741_v12, 0.0 }
 0x115   : > { %v743_v47 = vpop.f32.mrf.mxu0 }
 0x116   : > { %v744_v10 = vadd.f32 %v743_v47, %v614_v59  ;;  %v789_v47 = vld [vmem:[%s3554_s5 + $0x48] sm:$0xff] }
 0x118   : > { %v773_v16 = vmax.f32 %v744_v10, 0.0 }
 0x11d   : > { %v746_v48 = vpop.f32.mrf.mxu0 }
 0x11e   : > { %v747_v8 = vadd.f32 %v746_v48, %v619_v58  ;;  %v790_v48 = vld [vmem:[%s3554_s5 + $0x50] sm:$0xff] }
 0x120   : > { %v774_v13 = vmax.f32 %v747_v8, 0.0 }
 0x125   : > { %v749_v49 = vpop.f32.mrf.mxu0 }
 0x126   : > { %v750_v6 = vadd.f32 %v749_v49, %v624_v54  ;;  %v791_v49 = vld [vmem:[%s3554_s5 + $0x58] sm:$0xff] }
 0x128   : > { %v775_v11 = vmax.f32 %v750_v6, 0.0  ;;  %v880_v6 = vpop.permute.xlu0 %879 }
 0x12d   : > { %v752_v51 = vpop.f32.mrf.mxu0 }
 0x12e   : > { %v753_v2 = vadd.f32 %v752_v51, %v629_v57  ;;  %v793_v51 = vld [vmem:[%s3554_s5 + $0x68] sm:$0xff] }
 0x130   : > { %v776_v9 = vmax.f32 %v753_v2, 0.0  ;;  %v865_v10 = vpop.permute.xlu0 %864 }
 0x135   : > { %v755_v53 = vpop.f32.mrf.mxu0 }
 0x136   : > { %v756_v63 = vadd.f32 %v755_v53, %v634_v52  ;;  %v794_v52 = vld [vmem:[%s3554_s5 + $0x70] sm:$0xff]  ;;  %v795_v53 = vld [vmem:[%s3554_s5 + $0x78] sm:$0xff] }
 0x138   : > { %v777_v7 = vmax.f32 %v756_v63, 0.0 }
 0x13d   : > { %v758_v56 = vpop.f32.mrf.mxu0 }
 0x13e   : > { %v759_v61 = vadd.f32 %v758_v56, %v639_v55 }
 0x140   : > { %v778_v3 = vmax.f32 %v759_v61, 0.0 }
 0x145   : > { %v761_v60 = vpop.f32.mrf.mxu0 }
 0x146   : > { %v762_v62 = vadd.f32 %v761_v60, %v644_v50  ;;  %v792_v50 = vld [vmem:[%s3554_s5 + $0x60] sm:$0xff] }
 0x148   : > { %v779_v0 = vmax.f32 %v762_v62, 0.0 }
 0x14a   : > { %892 = vmatpush.msra.mxu1 %v779_v0 }
 0x14c   : > { %893 = vmatpush.msra.mxu1 %v778_v3  ;;  %v890_v3 = vpop.permute.xlu1 %889 }
 0x14e   : > { %894 = vmatpush.msra.mxu1 %v777_v7 }
 0x150   : > { %895 = vmatpush.msra.mxu1 %v776_v9  ;;  %v870_v9 = vpop.permute.xlu2 %869 }
 0x152   : > { %896 = vmatpush.msra.mxu1 %v775_v11 }
 0x154   : > { %897 = vmatpush.msra.mxu1 %v774_v13  ;;  %v875_v7 = vpop.permute.xlu1 %874 }
 0x156   : > { %898 = vmatpush.msra.mxu1 %v773_v16 }
 0x158   : > { %899 = vmatpush.msra.mxu1 %v772_v20  ;;  %v855_v17 = vpop.permute.xlu2 %854  ;;  %v850_v20 = vpop.permute.xlu0 %849 }
 0x15a   : > { %900 = vmatpush.msra.mxu1 %v771_v22 }
 0x15c   : > { %901 = vmatpush.msra.mxu1 %v770_v24  ;;  %v860_v11 = vpop.permute.xlu1 %859 }
 0x15e   : > { %902 = vmatpush.msra.mxu1 %v769_v26 }
 0x160   : > { %903 = vmatpush.msra.mxu1 %v768_v30  ;;  %v840_v31 = vpop.permute.xlu2 %839 }
 0x162   : > { %904 = vmatpush.msra.mxu1 %v767_v35  ;;  %v835_v35 = vpop.permute.xlu0 %834 }
 0x164   : > { %905 = vmatpush.msra.mxu1 %v766_v38  ;;  %v845_v23 = vpop.permute.xlu1 %844 }
 0x166   : > { %906 = vmatpush.msra.mxu1 %v765_v39 }
 0x168   : > { %907 = vmatpush.msra.mxu1 %v764_v40 }
 0x169   : > { %908 = vmatmul.f32.vlgmr.msra.gmra.mxu1 %v780_v36 }
 0x16c   : > { %v830_v39 = vpop.permute.xlu1 %829 }
 0x171   : > { %911 = vmatmul.f32.gmra.mxu1 %v781_v32 }
 0x179   : > { %914 = vmatmul.f32.gmra.mxu1 %v782_v28 }
 0x181   : > { %917 = vmatmul.f32.gmra.mxu1 %v783_v41 }
 0x189   : > { %920 = vmatmul.f32.gmra.mxu1 %v784_v42 }
 0x191   : > { %923 = vmatmul.f32.gmra.mxu1 %v785_v43  ;;  %v825_v43 = vpop.permute.xlu2 %824 }
 0x199   : > { %926 = vmatmul.f32.gmra.mxu1 %v786_v44 }
 0x1a1   : > { %929 = vmatmul.f32.gmra.mxu1 %v787_v45 }
 0x1a9   : > { %932 = vmatmul.f32.gmra.mxu1 %v788_v46  ;;  %v820_v46 = vpop.permute.xlu0 %819 }
 0x1b1   : > { %935 = vmatmul.f32.gmra.mxu1 %v789_v47 }
 0x1b9   : > { %938 = vmatmul.f32.gmra.mxu1 %v790_v48 }
 0x1c1   : > { %941 = vmatmul.f32.gmra.mxu1 %v791_v49  ;;  %v815_v49 = vpop.permute.xlu1 %814 }
 0x1c9   : > { %944 = vmatmul.f32.gmra.mxu1 %v792_v50 }
 0x1d1   : > { %947 = vmatmul.f32.gmra.mxu1 %v793_v51 }
 0x1d9   : > { %950 = vmatmul.f32.gmra.mxu1 %v794_v52 }
 0x1e1   : > { %953 = vmatmul.f32.gmra.mxu1 %v795_v53 }
 0x1e6   : > { %v2726_v54 = vpop.f32.mrf.mxu1 }
 0x1e7   : > { %v910_v50 = vadd.f32 %v2726_v54, %v815_v49  ;;  %v974_v54 = vld [vmem:[%s3556_s7 + $0x8] sm:$0xff] }
 0x1e9   : > { %v957_v53 = vmax.f32 %v910_v50, 0.0 }
 0x1ee   : > { %v2728_v55 = vpop.f32.mrf.mxu1 }
 0x1ef   : > { %v913_v47 = vadd.f32 %v2728_v55, %v820_v46  ;;  %v990_v55 = vld [vmem:[%s3556_s7 + $0x88] sm:$0xff] }
 0x1f1   : > { %v958_v52 = vmax.f32 %v913_v47, 0.0 }
 0x1f6   : > { %v2730_v56 = vpop.f32.mrf.mxu1 }
 0x1f7   : > { %v916_v44 = vadd.f32 %v2730_v56, %v825_v43  ;;  %v973_v56 = vld [vmem:[%s3556_s7] sm:$0xff] }
 0x1f9   : > { %v959_v51 = vmax.f32 %v916_v44, 0.0 }
 0x1fe   : > { %v2732_v57 = vpop.f32.mrf.mxu1 }
 0x1ff   : > { %v919_v41 = vadd.f32 %v2732_v57, %v830_v39  ;;  %v991_v57 = vld [vmem:[%s3556_s7 + $0x90] sm:$0xff] }
 0x201   : > { %v960_v48 = vmax.f32 %v919_v41, 0.0 }
 0x206   : > { %v921_v58 = vpop.f32.mrf.mxu1 }
 0x207   : > { %v922_v32 = vadd.f32 %v921_v58, %v835_v35  ;;  %v975_v58 = vld [vmem:[%s3556_s7 + $0x10] sm:$0xff] }
 0x209   : > { %v961_v45 = vmax.f32 %v922_v32, 0.0 }
 0x20e   : > { %v924_v59 = vpop.f32.mrf.mxu1 }
 0x20f   : > { %v925_v40 = vadd.f32 %v924_v59, %v840_v31  ;;  %v992_v59 = vld [vmem:[%s3556_s7 + $0x98] sm:$0xff] }
 0x211   : > { %v962_v42 = vmax.f32 %v925_v40, 0.0 }
 0x216   : > { %v927_v60 = vpop.f32.mrf.mxu1 }
 0x217   : > { %v928_v37 = vadd.f32 %v927_v60, %v845_v23  ;;  %v976_v60 = vld [vmem:[%s3556_s7 + $0x18] sm:$0xff] }
 0x219   : > { %v963_v28 = vmax.f32 %v928_v37, 0.0  ;;  %v1195_v37 = vpop.permute.xlu2 %1194 }
 0x21e   : > { %v930_v61 = vpop.f32.mrf.mxu1 }
 0x21f   : > { %v931_v33 = vadd.f32 %v930_v61, %v850_v20  ;;  %v993_v61 = vld [vmem:[%s3556_s7 + $0xa0] sm:$0xff]  ;;  %v988_v20 = vld [vmem:[%s3556_s7 + $0x78] sm:$0xff] }
 0x221   : > { %v964_v36 = vmax.f32 %v931_v33, 0.0  ;;  %v1185_v32 = vpop.permute.xlu2 %1184 }
 0x226   : > { %v933_v62 = vpop.f32.mrf.mxu1 }
 0x227   : > { %v934_v29 = vadd.f32 %v933_v62, %v855_v17  ;;  %v977_v62 = vld [vmem:[%s3556_s7 + $0x20] sm:$0xff]  ;;  %v1003_v17 = vld [vmem:[%s3556_s7 + $0xf0] sm:$0xff] }
 0x229   : > { %v965_v38 = vmax.f32 %v934_v29, 0.0  ;;  %v1105_v46 = vpop.permute.xlu2 %1104 }
 0x22e   : > { %v936_v63 = vpop.f32.mrf.mxu1 }
 0x22f   : > { %v937_v26 = vadd.f32 %v936_v63, %v860_v11  ;;  %v994_v63 = vld [vmem:[%s3556_s7 + $0xa8] sm:$0xff]  ;;  %v1000_v11 = vld [vmem:[%s3556_s7 + $0xd8] sm:$0xff] }
 0x231   : > { %v966_v34 = vmax.f32 %v937_v26, 0.0 }
 0x236   : > { %v939_v0 = vpop.f32.mrf.mxu1 }
 0x237   : > { %v940_v24 = vadd.f32 %v939_v0, %v865_v10  ;;  %v978_v0 = vld [vmem:[%s3556_s7 + $0x28] sm:$0xff]  ;;  %v983_v10 = vld [vmem:[%s3556_s7 + $0x50] sm:$0xff] }
 0x239   : > { %v967_v30 = vmax.f32 %v940_v24, 0.0 }
 0x23e   : > { %v942_v1 = vpop.f32.mrf.mxu1 }
 0x23f   : > { %v943_v21 = vadd.f32 %v942_v1, %v870_v9  ;;  %v995_v1 = vld [vmem:[%s3556_s7 + $0xb0] sm:$0xff] }
 0x240   : > { %v999_v9 = vld [vmem:[%s3556_s7 + $0xd0] sm:$0xff] }
 0x241   : > { %v968_v27 = vmax.f32 %v943_v21, 0.0  ;;  %v989_v21 = vld [vmem:[%s3556_s7 + $0x80] sm:$0xff] }
 0x246   : > { %v945_v2 = vpop.f32.mrf.mxu1 }
 0x247   : > { %v946_v18 = vadd.f32 %v945_v2, %v875_v7  ;;  %v979_v2 = vld [vmem:[%s3556_s7 + $0x30] sm:$0xff]  ;;  %v998_v7 = vld [vmem:[%s3556_s7 + $0xc8] sm:$0xff] }
 0x249   : > { %v969_v25 = vmax.f32 %v946_v18, 0.0  ;;  %v987_v18 = vld [vmem:[%s3556_s7 + $0x70] sm:$0xff] }
 0x24e   : > { %v948_v5 = vpop.f32.mrf.mxu1 }
 0x24f   : > { %v949_v15 = vadd.f32 %v948_v5, %v880_v6  ;;  %v997_v5 = vld [vmem:[%s3556_s7 + $0xc0] sm:$0xff] }
 0x250   : > { %v981_v6 = vld [vmem:[%s3556_s7 + $0x40] sm:$0xff] }
 0x251   : > { %v970_v22 = vmax.f32 %v949_v15, 0.0  ;;  %v1002_v15 = vld [vmem:[%s3556_s7 + $0xe8] sm:$0xff] }
 0x256   : > { %v951_v8 = vpop.f32.mrf.mxu1 }
 0x257   : > { %v952_v13 = vadd.f32 %v951_v8, %v885_v4  ;;  %v980_v4 = vld [vmem:[%s3556_s7 + $0x38] sm:$0xff]  ;;  %v982_v8 = vld [vmem:[%s3556_s7 + $0x48] sm:$0xff] }
 0x259   : > { %v971_v19 = vmax.f32 %v952_v13, 0.0  ;;  %v1001_v13 = vld [vmem:[%s3556_s7 + $0xe0] sm:$0xff] }
 0x25e   : > { %v954_v12 = vpop.f32.mrf.mxu1 }
 0x25f   : > { %v955_v14 = vadd.f32 %v954_v12, %v890_v3  ;;  %v996_v3 = vld [vmem:[%s3556_s7 + $0xb8] sm:$0xff] }
 0x260   : > { %v984_v12 = vld [vmem:[%s3556_s7 + $0x58] sm:$0xff] }
 0x261   : > { %v972_v16 = vmax.f32 %v955_v14, 0.0  ;;  %v985_v14 = vld [vmem:[%s3556_s7 + $0x60] sm:$0xff] }
 0x263   : > { %1197 = vmatpush.msra.mxu2 %v972_v16  ;;  %2071 = vmatpush.msra.mxu3 %v972_v16  ;;  %v986_v16 = vld [vmem:[%s3556_s7 + $0x68] sm:$0xff] }
 0x265   : > { %1198 = vmatpush.msra.mxu2 %v971_v19  ;;  %2072 = vmatpush.msra.mxu3 %v971_v19  ;;  %v1004_v19 = vld [vmem:[%s3556_s7 + $0xf8] sm:$0xff] }
 0x267   : > { %1199 = vmatpush.msra.mxu2 %v970_v22  ;;  %2073 = vmatpush.msra.mxu3 %v970_v22 }
 0x269   : > { %1200 = vmatpush.msra.mxu2 %v969_v25  ;;  %2074 = vmatpush.msra.mxu3 %v969_v25 }
 0x26b   : > { %1201 = vmatpush.msra.mxu2 %v968_v27  ;;  %2075 = vmatpush.msra.mxu3 %v968_v27 }
 0x26d   : > { %1202 = vmatpush.msra.mxu2 %v967_v30  ;;  %2076 = vmatpush.msra.mxu3 %v967_v30 }
 0x26f   : > { %1203 = vmatpush.msra.mxu2 %v966_v34  ;;  %2077 = vmatpush.msra.mxu3 %v966_v34 }
 0x271   : > { %1204 = vmatpush.msra.mxu2 %v965_v38  ;;  %2078 = vmatpush.msra.mxu3 %v965_v38  ;;  %v1190_v38 = vpop.permute.xlu0 %1189 }
 0x273   : > { %1205 = vmatpush.msra.mxu2 %v964_v36  ;;  %2079 = vmatpush.msra.mxu3 %v964_v36  ;;  %v1115_v36 = vpop.permute.xlu1 %1114 }
 0x275   : > { %1206 = vmatpush.msra.mxu2 %v963_v28  ;;  %2080 = vmatpush.msra.mxu3 %v963_v28 }
 0x277   : > { %1207 = vmatpush.msra.mxu2 %v962_v42  ;;  %2081 = vmatpush.msra.mxu3 %v962_v42 }
 0x279   : > { %1208 = vmatpush.msra.mxu2 %v961_v45  ;;  %2082 = vmatpush.msra.mxu3 %v961_v45  ;;  %v1110_v42 = vpop.permute.xlu0 %1109 }
 0x27b   : > { %1209 = vmatpush.msra.mxu2 %v960_v48  ;;  %2083 = vmatpush.msra.mxu3 %v960_v48  ;;  %v1180_v43 = vpop.permute.xlu1 %1179 }
 0x27d   : > { %1210 = vmatpush.msra.mxu2 %v959_v51  ;;  %2084 = vmatpush.msra.mxu3 %v959_v51  ;;  %v1170_v51 = vpop.permute.xlu2 %1169 }
 0x27f   : > { %1211 = vmatpush.msra.mxu2 %v958_v52  ;;  %2085 = vmatpush.msra.mxu3 %v958_v52 }
 0x281   : > { %1212 = vmatpush.msra.mxu2 %v957_v53  ;;  %2086 = vmatpush.msra.mxu3 %v957_v53  ;;  %v1175_v47 = vpop.permute.xlu0 %1174 }
 0x282   : > { %1213 = vmatmul.f32.vlgmr.msra.gmra.mxu2 %v973_v56  ;;  %1264 = vmatmul.f32.vlgmr.msra.gmra.mxu3 %v990_v55 }
 0x283   : > { %v1100_v48 = vpop.permute.xlu1 %1099 }
 0x289   : > { %v1095_v52 = vpop.permute.xlu0 %1094 }
 0x28a   : > { %1216 = vmatmul.f32.gmra.mxu2 %v974_v54  ;;  %1267 = vmatmul.f32.gmra.mxu3 %v991_v57  ;;  %v1090_v54 = vpop.permute.xlu2 %1089 }
 0x28b   : > { %v1165_v53 = vpop.permute.xlu1 %1164 }
 0x291   : > { %v1160_v57 = vpop.permute.xlu0 %1159 }
 0x292   : > { %1219 = vmatmul.f32.gmra.mxu2 %v975_v58  ;;  %1270 = vmatmul.f32.gmra.mxu3 %v992_v59 }
 0x29a   : > { %1222 = vmatmul.f32.gmra.mxu2 %v976_v60  ;;  %1273 = vmatmul.f32.gmra.mxu3 %v993_v61  ;;  %v1085_v60 = vpop.permute.xlu1 %1084  ;;  %v1155_v61 = vpop.permute.xlu2 %1154 }
 0x2a2   : > { %1225 = vmatmul.f32.gmra.mxu2 %v977_v62  ;;  %1276 = vmatmul.f32.gmra.mxu3 %v994_v63 }
 0x2aa   : > { %1228 = vmatmul.f32.gmra.mxu2 %v978_v0  ;;  %1279 = vmatmul.f32.gmra.mxu3 %v995_v1  ;;  %v1080_v0 = vpop.permute.xlu0 %1079  ;;  %v1150_v1 = vpop.permute.xlu1 %1149 }
 0x2b2   : > { %1231 = vmatmul.f32.gmra.mxu2 %v979_v2  ;;  %1282 = vmatmul.f32.gmra.mxu3 %v996_v3 }
 0x2ba   : > { %1234 = vmatmul.f32.gmra.mxu2 %v980_v4  ;;  %1285 = vmatmul.f32.gmra.mxu3 %v997_v5  ;;  %v2868_v4 = vpop.permute.xlu2 %1074  ;;  %v1145_v5 = vpop.permute.xlu0 %1144 }
 0x2c2   : > { %1237 = vmatmul.f32.gmra.mxu2 %v981_v6  ;;  %1288 = vmatmul.f32.gmra.mxu3 %v998_v7  ;;  %v2870_v6 = vpop.permute.xlu1 %1069 }
 0x2ca   : > { %1240 = vmatmul.f32.gmra.mxu2 %v982_v8  ;;  %1291 = vmatmul.f32.gmra.mxu3 %v999_v9 }
 0x2d2   : > { %1243 = vmatmul.f32.gmra.mxu2 %v983_v10  ;;  %1294 = vmatmul.f32.gmra.mxu3 %v1000_v11 }
 0x2da   : > { %1246 = vmatmul.f32.gmra.mxu2 %v984_v12  ;;  %1297 = vmatmul.f32.gmra.mxu3 %v1001_v13  ;;  %v1140_v13 = vpop.permute.xlu2 %1139 }
 0x2e2   : > { %1249 = vmatmul.f32.gmra.mxu2 %v985_v14  ;;  %1300 = vmatmul.f32.gmra.mxu3 %v1002_v15 }
 0x2ea   : > { %1252 = vmatmul.f32.gmra.mxu2 %v986_v16  ;;  %1303 = vmatmul.f32.gmra.mxu3 %v1003_v17  ;;  %v2872_v16 = vpop.permute.xlu0 %1064 }
 0x2f2   : > { %1255 = vmatmul.f32.gmra.mxu2 %v987_v18  ;;  %1306 = vmatmul.f32.gmra.mxu3 %v1004_v19  ;;  %v1135_v19 = vpop.permute.xlu1 %1134 }
 0x2fa   : > { %1258 = vmatmul.f32.gmra.mxu2 %v988_v20 }
 0x302   : > { %1261 = vmatmul.f32.gmra.mxu2 %v989_v21 }
 0x305   : > { %v2834_v22 = vpop.f32.mrf.mxu2  ;;  %v2836_v23 = vpop.f32.mrf.mxu3 }
 0x306   : > { %3570 = vst [vmem:[#allocation10_spill] sm:$0xff] %v2834_v22 }
 0x30d   : > { %v2838_v24 = vpop.f32.mrf.mxu2  ;;  %v2840_v25 = vpop.f32.mrf.mxu3 }
 0x30e   : > { %3571 = vst [vmem:[#allocation11_spill] sm:$0xff] %v2838_v24 }
 0x315   : > { %v2842_v26 = vpop.f32.mrf.mxu2  ;;  %v2844_v27 = vpop.f32.mrf.mxu3 }
 0x316   : > { %3572 = vst [vmem:[#allocation12_spill] sm:$0xff] %v2842_v26 }
 0x31d   : > { %v2846_v29 = vpop.f32.mrf.mxu2  ;;  %v2848_v30 = vpop.f32.mrf.mxu3 }
 0x325   : > { %v2850_v31 = vpop.f32.mrf.mxu2  ;;  %v2852_v33 = vpop.f32.mrf.mxu3 }
 0x32d   : > { %v2854_v34 = vpop.f32.mrf.mxu2  ;;  %v2856_v35 = vpop.f32.mrf.mxu3 }
 0x335   : > { %v2858_v39 = vpop.f32.mrf.mxu2  ;;  %v2860_v40 = vpop.f32.mrf.mxu3 }
 0x33d   : > { %v2862_v28 = vpop.f32.mrf.mxu2  ;;  %v1286_v41 = vpop.f32.mrf.mxu3 }
 0x345   : > { %v2864_v44 = vpop.f32.mrf.mxu2  ;;  %v1289_v45 = vpop.f32.mrf.mxu3 }
 0x34d   : > { %v2866_v49 = vpop.f32.mrf.mxu2  ;;  %v1292_v50 = vpop.f32.mrf.mxu3 }
 0x34e   : > { %v1293_v21 = vadd.f32 %v1292_v50, %v1170_v51 }
 0x355   : > { %v1244_v56 = vpop.f32.mrf.mxu2  ;;  %v1295_v55 = vpop.f32.mrf.mxu3 }
 0x356   : > { %v1296_v17 = vadd.f32 %v1295_v55, %v1175_v47  ;;  %v1060_v47 = vpop.permute.xlu2 %1059  ;;  %v1284_v55 = vadd.f32 %v2860_v40, %v1155_v61 }
 0x35d   : > { %v1247_v58 = vpop.f32.mrf.mxu2  ;;  %v1298_v59 = vpop.f32.mrf.mxu3 }
 0x35e   : > { %v1299_v14 = vadd.f32 %v1298_v59, %v1180_v43  ;;  %v1287_v43 = vadd.f32 %v1286_v41, %v1160_v57  ;;  %v1336_v59 = vmax.f32 %v1293_v21, 0.0  ;;  %v1248_v50 = vadd.f32 %v1247_v58, %v1095_v52  ;;  %v1055_v41 = vpop.permute.xlu1 %1054 }
 0x35f   : > { %v1275_v52 = vadd.f32 %v2848_v30, %v1140_v13  ;;  %v1239_v57 = vadd.f32 %v2864_v44, %v1080_v0  ;;  %v1233_v30 = vadd.f32 %v2858_v39, %v2870_v6 }
 0x360   : > { %v1338_v22 = vmax.f32 %v1299_v14, 0.0  ;;  %v1321_v40 = vmax.f32 %v1248_v50, 0.0  ;;  %v1405_v50 = vstv %s2016_s12  ;;  %s3045_s12 = sld [smem:[#allocation2 + $0xd]] }
 0x361   : > { %v1330_v61 = vmax.f32 %v1275_v52, 0.0  ;;  %v1318_v44 = vmax.f32 %v1239_v57, 0.0 }
 0x365   : > { %v1250_v62 = vpop.f32.mrf.mxu2  ;;  %v1301_v63 = vpop.f32.mrf.mxu3 }
 0x366   : > { %v1302_v11 = vadd.f32 %v1301_v63, %v1185_v32 }
 0x368   : > { %v1339_v18 = vmax.f32 %v1302_v11, 0.0 }
 0x36d   : > { %v1253_v2 = vpop.f32.mrf.mxu2  ;;  %v1304_v3 = vpop.f32.mrf.mxu3 }
 0x36e   : > { %v1305_v9 = vadd.f32 %v1304_v3, %v1190_v38  ;;  %v1290_v38 = vadd.f32 %v1289_v45, %v1165_v53  ;;  %v1254_v32 = vadd.f32 %v1253_v2, %v1105_v46  ;;  %v1251_v3 = vadd.f32 %v1250_v62, %v1100_v48 }
 0x36f   : > { %v1334_v45 = vmax.f32 %v1287_v43, 0.0  ;;  %v1333_v46 = vmax.f32 %v1284_v55, 0.0  ;;  %v1242_v48 = vadd.f32 %v2866_v49, %v1085_v60  ;;  %v1125_v49 = vpop.permute.xlu2 %1124  ;;  %v1397_v43 = vstv %s2014_s25  ;;  %s3007_s25 = sld [smem:[#allocation2 + $0xc]] }
 0x370   : > { %v1340_v15 = vmax.f32 %v1305_v9, 0.0  ;;  %v1335_v9 = vmax.f32 %v1290_v38, 0.0  ;;  %v1323_v51 = vmax.f32 %v1254_v32, 0.0  ;;  %v2903_v32 = vld [vmem:[%s2399_s15] sm:$0xff] }
 0x371   : > { %v1319_v58 = vmax.f32 %v1242_v48, 0.0 }
 0x375   : > { %v1256_v7 = vpop.f32.mrf.mxu2  ;;  %v1307_v8 = vpop.f32.mrf.mxu3 }
 0x376   : > { %v1308_v10 = vadd.f32 %v1307_v8, %v1195_v37  ;;  %v1257_v24 = vadd.f32 %v1256_v7, %v1110_v42  ;;  %v1337_v37 = vmax.f32 %v1296_v17, 0.0  ;;  %v1281_v42 = vadd.f32 %v2856_v35, %v1150_v1 }
 0x377   : > { %v1316_v7 = vmax.f32 %v1233_v30, 0.0  ;;  %v1045_v14 = vpop.permute.xlu2 %1044 }
 0x378   : > { %v1341_v12 = vmax.f32 %v1308_v10, 0.0  ;;  %v1324_v8 = vmax.f32 %v1257_v24, 0.0  ;;  %v1278_v24 = vadd.f32 %v2852_v33, %v1145_v5  ;;  %v1332_v53 = vmax.f32 %v1281_v42, 0.0 }
 0x379   : > { %v1236_v33 = vadd.f32 %v2862_v28, %v2868_v4  ;;  %v1230_v28 = vadd.f32 %v2854_v34, %v2872_v16  ;;  %v1120_v4 = vpop.permute.xlu1 %1119  ;;  %v1227_v5 = vadd.f32 %v2850_v31, %v1060_v47  ;;  %v1224_v10 = vadd.f32 %v2846_v29, %v1055_v41  ;;  %v1343_v31 = vld [vmem:[%s3558_s9 + $0x8] sm:$0xff] }
 0x37a   : > { %1370 = vmatpush.msrb.mxu3 %v1341_v12  ;;  %v2916_v47 = vsub.f32 %v2903_v32, %v1397_v43  ;;  %v2933_v42 = vsub.f32 %v2903_v32, %v1405_v50 }
 0x37b   : > { %v1317_v2 = vmax.f32 %v1236_v33, 0.0  ;;  %v1315_v11 = vmax.f32 %v1230_v28, 0.0  ;;  %v1314_v34 = vmax.f32 %v1227_v5, 0.0  ;;  %v1313_v17 = vmax.f32 %v1224_v10, 0.0 }
 0x37c   : > { %1371 = vmatpush.msrb.mxu3 %v1340_v15  ;;  %v3574_v15 = vld [vmem:[#allocation11_spill] sm:$0xff]  ;;  %vm1434_vm3 = vcmp.lt.f32.partialorder %v2916_v47, 0.0  ;;  %vm1440_vm6 = vcmp.ge.f32.partialorder %v2916_v47, 0.0  ;;  %vm1450_vm13 = vcmp.lt.f32.partialorder %v2933_v42, 0.0 }
 0x37d   : > { %v1259_v20 = vpop.f32.mrf.mxu2  ;;  %v1218_v16 = vadd.f32 %v3574_v15, %v1045_v14 }
 0x37e   : > { %v1260_v26 = vadd.f32 %v1259_v20, %v1115_v36  ;;  %1372 = vmatpush.msrb.mxu3 %v1339_v18  ;;  %v1130_v36 = vpop.permute.xlu0 %1129  ;;  %v3575_v18 = vld [vmem:[#allocation10_spill] sm:$0xff] }
 0x37f   : > { %v1269_v60 = vadd.f32 %v2840_v25, %v1130_v36  ;;  %v1311_v21 = vmax.f32 %v1218_v16, 0.0 }
 0x380   : > { %v1325_v63 = vmax.f32 %v1260_v26, 0.0  ;;  %1373 = vmatpush.msrb.mxu3 %v1338_v22  ;;  %v1245_v26 = vadd.f32 %v1244_v56, %v1090_v54  ;;  %v1322_v22 = vmax.f32 %v1251_v3, 0.0  ;;  %v1272_v56 = vadd.f32 %v2844_v27, %v1135_v19 }
 0x381   : > { %v1331_v54 = vmax.f32 %v1278_v24, 0.0  ;;  %v1266_v27 = vadd.f32 %v2836_v23, %v1125_v49  ;;  %v1328_v25 = vmax.f32 %v1269_v60, 0.0  ;;  %v3573_v23 = vld [vmem:[#allocation12_spill] sm:$0xff]  ;;  %v1401_v3 = vstv %s2015_s14  ;;  %s3017_s14 = sld [smem:[#allocation2 + $0x14]] }
 0x382   : > { %1350 = vmatpush.msrb.mxu0 %v1325_v63  ;;  %1374 = vmatpush.msrb.mxu3 %v1337_v37  ;;  %v1320_v35 = vmax.f32 %v1245_v26, 0.0  ;;  %v1329_v1 = vmax.f32 %v1272_v56, 0.0  ;;  %v1342_v37 = vld [vmem:[%s3558_s9] sm:$0xff]  ;;  %v1393_v63 = vstv %s1392_s1  ;;  %v1417_v24 = vstv %s2910_s16  ;;  %s2993_s1 = sld [smem:[#allocation2 + $0x13]] }
 0x383   : > { %v1327_v6 = vmax.f32 %v1266_v27, 0.0  ;;  %v2985_v56 = vsub.f32 %v2903_v32, %v1417_v24  ;;  %s3117_s16 = sld [smem:[#allocation2 + $0x16]] }
 0x384   : > { %1351 = vmatpush.msrb.mxu0 %v1324_v8  ;;  %1375 = vmatpush.msrb.mxu3 %v1336_v59  ;;  %v2906_v59 = vld [vmem:[%s2399_s15 + $0x8] sm:$0xff]  ;;  %v2913_v8 = vsub.f32 %v2903_v32, %v1393_v63  ;;  %s2956_s15 = sld [smem:[#allocation2 + $0xa]] }
 0x385   : > { %v1262_v0 = vpop.f32.mrf.mxu2  ;;  %v2921_v55 = vsub.f32 %v2906_v59, %v1393_v63  ;;  %v2930_v36 = vsub.f32 %v2906_v59, %v1401_v3  ;;  %v2941_v26 = vsub.f32 %v2906_v59, %v1405_v50  ;;  %v2996_v33 = vsub.f32 %v2906_v59, %v1417_v24 }
 0x386   : > { %1352 = vmatpush.msrb.mxu0 %v1323_v51  ;;  %1376 = vmatpush.msrb.mxu3 %v1335_v9  ;;  %v1050_v62 = vpop.permute.xlu0 %1049  ;;  %v1263_v39 = vadd.f32 %v1262_v0, %v1120_v4  ;;  %v2924_v9 = vsub.f32 %v2906_v59, %v1397_v43  ;;  %v2927_v51 = vsub.f32 %v2903_v32, %v1401_v3  ;;  %vm1432_vm2 = vcmp.ge.f32.partialorder %v2913_v8, 0.0 }
 0x387   : > { %v1221_v12 = vadd.f32 %v3573_v23, %v1050_v62  ;;  %vm1433_vm4 = vcmp.ge.f32.partialorder %v2921_v55, 0.0  ;;  %vm2950_vm8 = vmand %vm1432_vm2, %vm1434_vm3  ;;  %vm1443_vm10 = vcmp.lt.f32.partialorder %v2930_v36, 0.0  ;;  %vm1449_vm0 = vcmp.ge.f32.partialorder %v2930_v36, 0.0 }
 0x388   : > { %1353 = vmatpush.msrb.mxu0 %v1322_v22  ;;  %1377 = vmatpush.msrb.mxu3 %v1334_v45  ;;  %v1326_v13 = vmax.f32 %v1263_v39, 0.0  ;;  %v1409_v45 = vstv %s2900_s27  ;;  %vm1435_vm5 = vcmp.lt.f32.partialorder %v2924_v9, 0.0  ;;  %v1413_v22 = vstv %s2908_s30  ;;  %s3055_s27 = sld [smem:[#allocation2 + $0x15]] }
 0x389   : > { %v1312_v20 = vmax.f32 %v1221_v12, 0.0  ;;  %vm1442_vm7 = vcmp.lt.f32.partialorder %v2927_v51, 0.0  ;;  %v2947_v41 = vsub.f32 %v2903_v32, %v1409_v45  ;;  %vm1441_vm9 = vcmp.ge.f32.partialorder %v2924_v9, 0.0  ;;  %vm2962_vm11 = vmand %vm1433_vm4, %vm1435_vm5  ;;  %s3083_s30 = sld [smem:[#allocation2 + $0xe]] }
 0x38a   : > { %1354 = vmatpush.msrb.mxu0 %v1321_v40  ;;  %1378 = vmatpush.msrb.mxu3 %v1333_v46  ;;  %v2959_v48 = vsub.f32 %v2906_v59, %v1409_v45  ;;  %v1421_v40 = vstv %s2918_s22  ;;  %vm1448_vm12 = vcmp.ge.f32.partialorder %v2927_v51, 0.0  ;;  %vm2975_vm14 = vmand %vm1440_vm6, %vm1442_vm7  ;;  %vm1451_vm1 = vcmp.lt.f32.partialorder %v2941_v26, 0.0  ;;  %s3125_s22 = sld [smem:[#allocation2 + $0xf]] }
 0x38b   : > { %vm2987_vm15 = vmand %vm1441_vm9, %vm1443_vm10  ;;  %vm1456_vm3 = vcmp.ge.f32.partialorder %v2933_v42, 0.0  ;;  %vm1458_vm4 = vcmp.lt.f32.partialorder %v2947_v41, 0.0  ;;  %v3010_v60 = vsub.f32 %v2906_v59, %v1421_v40  ;;  %vm1457_vm5 = vcmp.ge.f32.partialorder %v2941_v26, 0.0 }
 0x38c   : > { %1355 = vmatpush.msrb.mxu0 %v1320_v35  ;;  %1379 = vmatpush.msrb.mxu3 %v1332_v53  ;;  %v2971_v53 = vsub.f32 %v2903_v32, %v1413_v22  ;;  %v2982_v35 = vsub.f32 %v2906_v59, %v1413_v22  ;;  %vm3001_vm2 = vmand %vm1448_vm12, %vm1450_vm13  ;;  %vm1459_vm6 = vcmp.lt.f32.partialorder %v2959_v48, 0.0  ;;  %v1505_v28 = vstv %s2956_s15  ;;  %s3131_s15 = sld [smem:[#allocation2 + $0x17]] }
 0x38d   : > { %vm1453_vm7 = vmand %vm1449_vm0, %vm1451_vm1  ;;  %vm1474_vm0 = vcmp.lt.f32.partialorder %v2985_v56, 0.0  ;;  %v1507_v10 = vmul.f32 %v1505_v28, %v2921_v55  ;;  %v1539_v16 = vstv %s3017_s14  ;;  %v1547_v63 = vstv %s3045_s12  ;;  %s3190_s14 = sld [smem:[#allocation2 + $0x1c]] }
 0x38e   : > { %1356 = vmatpush.msrb.mxu0 %v1319_v58  ;;  %1380 = vmatpush.msrb.mxu3 %v1331_v54  ;;  %v1040_v29 = vpop.permute.xlu0 %1039  ;;  %v2999_v58 = vsub.f32 %v2903_v32, %v1421_v40  ;;  %vm1466_vm9 = vcmp.lt.f32.partialorder %v2971_v53, 0.0  ;;  %vm1460_vm10 = vmand %vm1456_vm3, %vm1458_vm4  ;;  %vm1467_vm12 = vcmp.lt.f32.partialorder %v2982_v35, 0.0  ;;  %vm1480_vm3 = vcmp.ge.f32.partialorder %v2985_v56, 0.0  ;;  %s3195_s12 = sld [smem:[#allocation2 + $0x23]] }
 0x38f   : > { %v1215_v19 = vadd.f32 %v3575_v18, %v1040_v29  ;;  %vm3047_vm13 = vmand %vm1457_vm5, %vm1459_vm6  ;;  %vm1481_vm5 = vcmp.ge.f32.partialorder %v2996_v33, 0.0  ;;  %v1540_v3 = vmul.f32 %v1539_v16, %v2947_v41  ;;  %v1541_v50 = vmul.f32 %v1539_v16, %v2959_v48 }
 0x390   : > { %1357 = vmatpush.msrb.mxu0 %v1318_v44  ;;  %1381 = vmatpush.msrb.mxu3 %v1330_v61  ;;  %v2240_v61 = vmov 0.0   ;;  %vm1482_vm6 = vcmp.lt.f32.partialorder %v2999_v58, 0.0  ;;  %v1553_v45 = vstv %s3055_s27  ;;  %v1561_v4 = vstv %s3083_s30  ;;  %s3201_s27 = sld [smem:[#allocation2 + $0x1d]] }
 0x391   : > { %v1310_v38 = vmax.f32 %v1215_v19, 0.0  ;;  %v1438_v30 = vsel %vm2950_vm8, 1.0, %v2240_v61  ;;  %v1439_v44 = vsel %vm2962_vm11, 1.0, %v2240_v61  ;;  %v1446_v62 = vsel %vm2975_vm14, 1.0, %v2240_v61  ;;  %s3221_s30 = sld [smem:[#allocation2 + $0x24]] }
 0x392   : > { %1358 = vmatpush.msrb.mxu0 %v1317_v2  ;;  %1382 = vmatpush.msrb.mxu3 %v1329_v1  ;;  %vm1464_vm8 = vcmp.ge.f32.partialorder %v2947_v41, 0.0  ;;  %v1447_v0 = vsel %vm2987_vm15, 1.0, %v2240_v61  ;;  %v3037_v27 = vsel %vm3001_vm2, 1.0, %v2240_v61  ;;  %vm1465_vm11 = vcmp.ge.f32.partialorder %v2959_v48, 0.0 }
 0x393   : > { %vm1472_vm14 = vcmp.ge.f32.partialorder %v2971_v53, 0.0  ;;  %vm1473_vm15 = vcmp.ge.f32.partialorder %v2982_v35, 0.0  ;;  %v1455_v2 = vsel %vm1453_vm7, 1.0, %v2240_v61  ;;  %vm3060_vm1 = vmand %vm1464_vm8, %vm1466_vm9  ;;  %vm1475_vm2 = vcmp.lt.f32.partialorder %v2996_v33, 0.0 }
 0x394   : > { %1359 = vmatpush.msrb.mxu0 %v1316_v7  ;;  %1383 = vmatpush.msrb.mxu3 %v1328_v25  ;;  %v1511_v25 = vstv %s2968_s13  ;;  %v1462_v5 = vsel %vm1460_vm10, 1.0, %v2240_v61  ;;  %vm1469_vm4 = vmand %vm1465_vm11, %vm1467_vm12  ;;  %v1519_v7 = vstv %s2979_s24  ;;  %vm1483_vm8 = vcmp.lt.f32.partialorder %v3010_v60, 0.0  ;;  %s3150_s13 = sld [smem:[#allocation2 + $0x1a]] }
 0x395   : > { %vm3075_vm7 = vmand %vm1472_vm14, %vm1474_vm0  ;;  %v1463_v23 = vsel %vm3047_vm13, 1.0, %v2240_v61  ;;  %v3091_v12 = vsel %vm3060_vm1, 1.0, %v2240_v61  ;;  %v1513_v14 = vmul.f32 %v1511_v25, %v2930_v36  ;;  %v1520_v15 = vmul.f32 %v1519_v7, %v2916_v47  ;;  %s3162_s24 = sld [smem:[#allocation2 + $0x21]] }
 0x396   : > { %1360 = vmatpush.msrb.mxu0 %v1315_v11  ;;  %1384 = vmatpush.msrb.mxu3 %v1327_v6  ;;  %v1506_v6 = vmul.f32 %v1505_v28, %v2913_v8  ;;  %v1525_v11 = vstv %s2993_s1  ;;  %vm3105_vm9 = vmand %vm1473_vm15, %vm1475_vm2  ;;  %v3112_v29 = vsel %vm3075_vm7, 1.0, %v2240_v61  ;;  %v1521_v18 = vmul.f32 %v1519_v7, %v2924_v9  ;;  %s3168_s1 = sld [smem:[#allocation2 + $0x1b]] }
 0x397   : > { %v1526_v19 = vmul.f32 %v1525_v11, %v2933_v42  ;;  %v3136_v22 = vsel %vm3105_vm9, 1.0, %v2240_v61  ;;  %vm3142_vm10 = vmand %vm1480_vm3, %vm1482_vm6  ;;  %v3148_v40 = vmul.f32 %v1513_v14, %v1447_v0  ;;  %v1522_v52 = vmul.f32 %v1520_v15, %v1446_v62 }
 0x398   : > { %1361 = vmatpush.msrb.mxu0 %v1314_v34  ;;  %1385 = vmatpush.msrb.mxu3 %v1326_v13  ;;  %v1512_v34 = vmul.f32 %v1511_v25, %v2927_v51  ;;  %v1533_v13 = vstv %s3007_s25  ;;  %vm3156_vm11 = vmand %vm1481_vm5, %vm1483_vm8  ;;  %v1523_v54 = vmul.f32 %v1521_v18, %v1447_v0  ;;  %v1554_v1 = vmul.f32 %v1553_v45, %v2971_v53  ;;  %s3171_s25 = sld [smem:[#allocation2 + $0x22]] }
 0x399   : > { %1386 = vmatmul.f32.vlgmr.msrb.gmra.mxu3 %v1343_v31  ;;  %v3096_v31 = vsel %vm1469_vm4, 1.0, %v2240_v61  ;;  %v1535_v43 = vmul.f32 %v1533_v13, %v2930_v36  ;;  %v1528_v49 = vmul.f32 %v1526_v19, %v3037_v27  ;;  %v1555_v28 = vmul.f32 %v1553_v45, %v2982_v35 }
 0x39a   : > { %1362 = vmatpush.msrb.mxu0 %v1313_v17  ;;  %v3146_v46 = vmul.f32 %v1512_v34, %v1446_v62  ;;  %v1549_v62 = vmul.f32 %v1547_v63, %v2941_v26  ;;  %v1542_v7 = vmul.f32 %v1540_v3, %v1462_v5  ;;  %v1543_v39 = vmul.f32 %v1541_v50, %v1463_v23 }
 0x39b   : > { %v1537_v0 = vmul.f32 %v1535_v43, %v1455_v2  ;;  %v1562_v34 = vmul.f32 %v1561_v4, %v2947_v41  ;;  %v1567_v14 = vstv %s3117_s16  ;;  %v1556_v16 = vmul.f32 %v1554_v1, %v3091_v12  ;;  %s3227_s16 = sld [smem:[#allocation2 + $0x1e]] }
 0x39c   : > { %1363 = vmatpush.msrb.mxu0 %v1312_v20  ;;  %v1527_v20 = vmul.f32 %v1525_v11, %v2941_v26  ;;  %v1551_v15 = vmul.f32 %v1549_v62, %v1463_v23  ;;  %v1557_v17 = vmul.f32 %v1555_v28, %v3096_v31  ;;  %v1575_v18 = vstv %s3125_s22  ;;  %s3233_s22 = sld [smem:[#allocation2 + $0x25]] }
 0x39d   : > { %v1530_v19 = vsub.f32 %v1522_v52, %v1528_v49  ;;  %v1617_v23 = vstv %s3150_s13  ;;  %v1564_v43 = vmul.f32 %v1562_v34, %v3091_v12  ;;  %v1576_v50 = vmul.f32 %v1575_v18, %v2971_v53  ;;  %s3248_s13 = sld [smem:[#allocation2 + $0x2e]] }
 0x39e   : > { %1364 = vmatpush.msrb.mxu0 %v1311_v21  ;;  %v3119_v21 = vmul.f32 %v1506_v6, %v1438_v30  ;;  %v1529_v30 = vmul.f32 %v1527_v20, %v1455_v2  ;;  %v3176_v6 = vsel %vm3142_vm10, 1.0, %v2240_v61  ;;  %v1623_v45 = vstv %s3162_s24  ;;  %s3255_s24 = sld [smem:[#allocation2 + $0x29]] }
 0x39f   : > { %v1631_v52 = vstv %s3168_s1  ;;  %v1618_v12 = vmul.f32 %v1617_v23, %v2913_v8  ;;  %v1637_v49 = vstv %s3171_s25  ;;  %v1624_v62 = vmul.f32 %v1623_v45, %v2933_v42  ;;  %s3257_s1 = sld [smem:[#allocation2 + $0x2f]] }
 0x3a0   : > { %1365 = vmatpush.msrb.mxu0 %v1310_v38  ;;  %v3121_v38 = vmul.f32 %v1507_v10, %v1439_v44  ;;  %v1548_v44 = vmul.f32 %v1547_v63, %v2933_v42  ;;  %v3181_v10 = vsel %vm3156_vm11, 1.0, %v2240_v61  ;;  %v1516_v11 = vsub.f32 %v3119_v21, %v3146_v46  ;;  %s3270_s25 = sld [smem:[#allocation2 + $0x2a]] }
 0x3a1   : > { %1366 = vmatmul.f32.vlgmr.msrb.gmra.mxu0 %v1342_v37  ;;  %v1534_v37 = vmul.f32 %v1533_v13, %v2927_v51  ;;  %v1563_v13 = vmul.f32 %v1561_v4, %v2959_v48  ;;  %v1545_v21 = vsub.f32 %v1537_v0, %v1543_v39  ;;  %v1581_v63 = vstv %s3131_s15  ;;  %s3240_s15 = sld [smem:[#allocation2 + $0x28]] }
 0x3a2   : > { %v1550_v2 = vmul.f32 %v1548_v44, %v1462_v5  ;;  %v1531_v5 = vsub.f32 %v1523_v54, %v1529_v30  ;;  %v3209_v46 = vsub.f32 %v1551_v15, %v1557_v17  ;;  %v1582_v57 = vmul.f32 %v1581_v63, %v2999_v58 }
 0x3a3   : > { %v1536_v25 = vmul.f32 %v1534_v37, %v3037_v27  ;;  %v1517_v27 = vsub.f32 %v3121_v38, %v3148_v40  ;;  %v1568_v38 = vmul.f32 %v1567_v14, %v2985_v56  ;;  %v1569_v37 = vmul.f32 %v1567_v14, %v2996_v33 }
 0x3a4   : > { %v1565_v3 = vmul.f32 %v1563_v13, %v3096_v31  ;;  %v3207_v24 = vsub.f32 %v1550_v2, %v1556_v16  ;;  %v1577_v40 = vmul.f32 %v1575_v18, %v2982_v35  ;;  %v1583_v54 = vmul.f32 %v1581_v63, %v3010_v60 }
 0x3a5   : > { %v1544_v20 = vsub.f32 %v1536_v25, %v1542_v7  ;;  %v1570_v31 = vmul.f32 %v1568_v38, %v3112_v29  ;;  %v1571_v30 = vmul.f32 %v1569_v37, %v3136_v22  ;;  %v1619_v44 = vmul.f32 %v1617_v23, %v2921_v55 }
 0x3a6   : > { %v1578_v1 = vmul.f32 %v1576_v50, %v3112_v29  ;;  %v1625_v28 = vmul.f32 %v1623_v45, %v2941_v26  ;;  %v1632_v4 = vmul.f32 %v1631_v52, %v2916_v47  ;;  %v1645_v25 = vstv %s3190_s14  ;;  %s3278_s14 = sld [smem:[#allocation2 + $0x8]] }
 0x3a7   : > { %v1633_v0 = vmul.f32 %v1631_v52, %v2924_v9  ;;  %v1638_v7 = vmul.f32 %v1637_v49, %v2947_v41  ;;  %v1639_v39 = vmul.f32 %v1637_v49, %v2959_v48  ;;  %v1651_v2 = vstv %s3195_s12  ;;  %s3286_s12 = sld [smem:[#allocation2 + $0x9]] }
 0x3a8   : > { %v1579_v34 = vmul.f32 %v1577_v40, %v3136_v22  ;;  %v1584_v29 = vmul.f32 %v1582_v57, %v3176_v6  ;;  %v1585_v13 = vmul.f32 %v1583_v54, %v3181_v10  ;;  %v3238_v14 = vmul.f32 %v1618_v12, %v1516_v11 }
 0x3a9   : > { %v3242_v15 = vmul.f32 %v1619_v44, %v1517_v27  ;;  %v3244_v16 = vmul.f32 %v1624_v62, %v1530_v19  ;;  %v1646_v17 = vmul.f32 %v1645_v25, %v2927_v51  ;;  %v1659_v18 = vstv %s3201_s27  ;;  %s3297_s27 = sld [smem:[#allocation2 + $0x30]] }
 0x3aa   : > { %v3250_v38 = vmul.f32 %v1625_v28, %v1531_v5  ;;  %v1647_v22 = vmul.f32 %v1645_v25, %v2930_v36  ;;  %v1652_v37 = vmul.f32 %v1651_v2, %v2971_v53  ;;  %v1653_v11 = vmul.f32 %v1651_v2, %v2982_v35 }
 0x3ab   : > { %v1634_v63 = vmul.f32 %v1632_v4, %v1530_v19  ;;  %v1635_v27 = vmul.f32 %v1633_v0, %v1531_v5  ;;  %v1640_v23 = vmul.f32 %v1638_v7, %v1544_v20  ;;  %v1641_v50 = vmul.f32 %v1639_v39, %v1545_v21 }
 0x3ac   : > { %v1572_v45 = vsub.f32 %v1564_v43, %v1570_v31  ;;  %v1573_v40 = vsub.f32 %v1565_v3, %v1571_v30  ;;  %v1660_v52 = vmul.f32 %v1659_v18, %v2933_v42  ;;  %v1661_v57 = vmul.f32 %v1659_v18, %v2941_v26  ;;  %v1348_v31 = vpop.permute.xlu1 %1347 }
 0x3ad   : > { %v3261_v12 = vsub.f32 %v1578_v1, %v1584_v29  ;;  %v3263_v49 = vsub.f32 %v1579_v34, %v1585_v13  ;;  %v1628_v19 = vsub.f32 %v3238_v14, %v3244_v16  ;;  %v1648_v5 = vmul.f32 %v1646_v17, %v1544_v20 }
 0x3ae   : > { %v1649_v44 = vmul.f32 %v1647_v22, %v1545_v21  ;;  %v1654_v62 = vmul.f32 %v1652_v37, %v3207_v24  ;;  %v1655_v43 = vmul.f32 %v1653_v11, %v3209_v46  ;;  %v1665_v3 = vstv %s3221_s30  ;;  %s3301_s30 = sld [smem:[#allocation2 + $0x2b]] }
 0x3af   : > { %v1629_v30 = vsub.f32 %v3242_v15, %v3250_v38  ;;  %v1642_v1 = vsub.f32 %v1634_v63, %v1640_v23  ;;  %v1643_v28 = vsub.f32 %v1635_v27, %v1641_v50  ;;  %v1673_v4 = vstv %s3227_s16  ;;  %s3309_s16 = sld [smem:[#allocation2 + $0x31]] }
 0x3b0   : > { %v1662_v20 = vmul.f32 %v1660_v52, %v3207_v24  ;;  %v1663_v21 = vmul.f32 %v1661_v57, %v3209_v46  ;;  %v1679_v0 = vstv %s3233_s22  ;;  %v1666_v39 = vmul.f32 %v1665_v3, %v2985_v56  ;;  %s3318_s22 = sld [smem:[#allocation2 + $0x10]] }
 0x3b1   : > { %v1667_v2 = vmul.f32 %v1665_v3, %v2996_v33  ;;  %v1715_v34 = vstv %s3240_s15  ;;  %v1721_v29 = vstv %s3248_s13  ;;  %v1656_v13 = vsub.f32 %v1648_v5, %v1654_v62  ;;  %s3326_s15 = sld [smem:[#allocation2 + $0x18]] }
 0x3b2   : > { %v1657_v14 = vsub.f32 %v1649_v44, %v1655_v43  ;;  %v1674_v15 = vmul.f32 %v1673_v4, %v2947_v41  ;;  %v1729_v16 = vstv %s3255_s24  ;;  %v1675_v24 = vmul.f32 %v1673_v4, %v2959_v48  ;;  %s3335_s13 = sld [smem:[#allocation2 + $0x11]] }
 0x3b3   : > { %v1680_v46 = vmul.f32 %v1679_v0, %v2999_v58  ;;  %v1681_v17 = vmul.f32 %v1679_v0, %v3010_v60  ;;  %v1735_v18 = vstv %s3257_s1  ;;  %v1716_v22 = vmul.f32 %v1715_v34, %v2913_v8  ;;  %s3342_s24 = sld [smem:[#allocation2 + $0x19]] }
 0x3b4   : > { %v1717_v37 = vmul.f32 %v1715_v34, %v2921_v55  ;;  %v1722_v11 = vmul.f32 %v1721_v29, %v2947_v41  ;;  %v1668_v63 = vmul.f32 %v1666_v39, %v1572_v45  ;;  %v1669_v27 = vmul.f32 %v1667_v2, %v1573_v40  ;;  %s3381_s1 = sld [smem:[#allocation2 + $0x1f]] }
 0x3b5   : > { %v1723_v23 = vmul.f32 %v1721_v29, %v2959_v48  ;;  %v1730_v50 = vmul.f32 %v1729_v16, %v2916_v47  ;;  %v1731_v52 = vmul.f32 %v1729_v16, %v2924_v9  ;;  %v1736_v57 = vmul.f32 %v1735_v18, %v2971_v53 }
 0x3b6   : > { %v1737_v8 = vmul.f32 %v1735_v18, %v2982_v35  ;;  %v1743_v55 = vstv %s3270_s25  ;;  %v1677_v5 = vmul.f32 %v1675_v24, %v1573_v40  ;;  %v1682_v44 = vmul.f32 %v1680_v46, %v3261_v12  ;;  %s3391_s25 = sld [smem:[#allocation2 + $0x26]] }
 0x3b7   : > { %v1683_v62 = vmul.f32 %v1681_v17, %v3263_v49  ;;  %v3311_v43 = vmul.f32 %v1716_v22, %v1628_v19  ;;  %v3313_v47 = vmul.f32 %v1717_v37, %v1629_v30  ;;  %v3315_v3 = vmul.f32 %v1722_v11, %v1642_v1 }
 0x3b8   : > { %v1425_v9 = vstv %s3278_s14  ;;  %v1744_v40 = vmul.f32 %v1743_v55, %v2927_v51  ;;  %v1745_v4 = vmul.f32 %v1743_v55, %v2930_v36  ;;  %v3328_v19 = vmul.f32 %v1731_v52, %v1643_v28  ;;  %s3403_s14 = sld [smem:[#allocation2 + $0x20]] }
 0x3b9   : > { %v3330_v30 = vmul.f32 %v1736_v57, %v1656_v13  ;;  %v1429_v0 = vstv %s3286_s12  ;;  %v3340_v51 = vsub.f32 %v2903_v32, %v1425_v9  ;;  %v3344_v36 = vsub.f32 %v1677_v5, %v1683_v62  ;;  %s3415_s12 = sld [smem:[#allocation2 + $0x27]] }
 0x3ba   : > { %v1749_v2 = vstv %s3297_s27  ;;  %v3350_v34 = vsub.f32 %v2906_v59, %v1425_v9  ;;  %v1757_v29 = vstv %s3301_s30  ;;  %v3364_v46 = vmul.f32 %v1745_v4, %v1657_v14  ;;  %s3443_s27 = sld [smem:[#allocation2 + $0x2c]] }
 0x3bb   : > { %v3367_v17 = vsub.f32 %v2906_v59, %v1429_v0  ;;  %v1751_v18 = vmul.f32 %v1749_v2, %v2996_v33  ;;  %vm1488_vm12 = vcmp.ge.f32.partialorder %v2999_v58, 0.0  ;;  %vm1490_vm13 = vcmp.lt.f32.partialorder %v3340_v51, 0.0  ;;  %s3447_s30 = sld [smem:[#allocation2 + $0x32]] }
 0x3bc   : > { %v1758_v22 = vmul.f32 %v1757_v29, %v2933_v42  ;;  %v1759_v37 = vmul.f32 %v1757_v29, %v2941_v26  ;;  %vm1489_vm14 = vcmp.ge.f32.partialorder %v3010_v60, 0.0  ;;  %vm1491_vm15 = vcmp.lt.f32.partialorder %v3350_v34, 0.0  ;;  %vm3385_vm2 = vmand %vm1488_vm12, %vm1490_vm13 }
 0x3bd   : > { %vm1496_vm0 = vcmp.ge.f32.partialorder %v3340_v51, 0.0  ;;  %v1595_v11 = vstv %s3326_s15  ;;  %vm1497_vm3 = vcmp.ge.f32.partialorder %v3350_v34, 0.0  ;;  %vm1499_vm4 = vcmp.lt.f32.partialorder %v3367_v17, 0.0  ;;  %vm3397_vm5 = vmand %vm1489_vm14, %vm1491_vm15  ;;  %s2068_s15 = sshll.u32 %s2325_s21, 3  ;;  %s3604_s21 = sshll.u32 %s2391_s0, 4 }
 0x3be   : > { %v1603_v52 = vstv %s3335_s13  ;;  %v1609_v57 = vstv %s3342_s24  ;;  %v1596_v5 = vmul.f32 %v1595_v11, %v3340_v51  ;;  %v1494_v62 = vsel %vm3385_vm2, 1.0, %v2240_v61  ;;  %vm1501_vm7 = vmand %vm1497_vm3, %vm1499_vm4  ;;  %s2190_s13 = scalar_lea.hbm %s3560_s11, 48 }
 0x3bf   : > { %v1495_v9 = vsel %vm3397_vm5, 1.0, %v2240_v61  ;;  %v1503_v29 = vsel %vm1501_vm7, 1.0, %v2240_v61 }
 0x41c   : > { %v1387_v7 = vpop.f32.mrf.mxu3 }
 0x41e   : > { %v1367_v54 = vpop.f32.mrf.mxu0 }
 0x41f   : > { %v1368_v25 = vadd.f32 %v1367_v54, %v1348_v31  ;;  %v1676_v54 = vmul.f32 %v1674_v15, %v1572_v45  ;;  %v3320_v31 = vmul.f32 %v1723_v23, %v1643_v28  ;;  %v3322_v45 = vmul.f32 %v1730_v50, %v1642_v1 }
 0x420   : > { %v1671_v1 = vsub.f32 %v1663_v21, %v1669_v27  ;;  %v1726_v28 = vsub.f32 %v3311_v43, %v3315_v3  ;;  %v3354_v21 = vmul.f32 %v1744_v40, %v1656_v13  ;;  %v3358_v15 = vsub.f32 %v2903_v32, %v1429_v0 }
 0x421   : > { %v3292_v38 = vadd.f32 %v1387_v7, %v1368_v25  ;;  %v3332_v25 = vmul.f32 %v1737_v8, %v1657_v14  ;;  %v1670_v7 = vsub.f32 %v1662_v20, %v1668_v63  ;;  %v3337_v39 = vsub.f32 %v1676_v54, %v1682_v44 }
 0x422   : > { %v1727_v20 = vsub.f32 %v3313_v47, %v3320_v31  ;;  %v1740_v16 = vsub.f32 %v3322_v45, %v3330_v30  ;;  %v1750_v13 = vmul.f32 %v1749_v2, %v2985_v56  ;;  %vm1498_vm1 = vcmp.lt.f32.partialorder %v3358_v15, 0.0 }
 0x423   : > { %v1741_v24 = vsub.f32 %v3328_v19, %v3332_v25  ;;  %v1589_v14 = vstv %s3318_s22  ;;  %v1763_v63 = vstv %s3309_s16  ;;  %v1798_v27 = vperm.slane %v3292_v38, 0  ;;  %vm1500_vm6 = vmand %vm1496_vm0, %vm1498_vm1  ;;  %s3463_s16 = sld [smem:[#allocation2 + $0x2d]] }
 0x424   : > { %v1801_v26 = vperm.slane %v3292_v38, 1  ;;  %v1806_v23 = vperm.slane %v3292_v38, 2  ;;  %v3405_v8 = vmul.f32 %v1750_v13, %v1670_v7  ;;  %v3407_v55 = vmul.f32 %v1751_v18, %v1671_v1  ;;  %s3468_s22 = sld [smem:[#allocation2 + $0x33]] }
 0x425   : > { %v1590_v54 = vmul.f32 %v1589_v14, %v2985_v56  ;;  %v3417_v44 = vmul.f32 %v1758_v22, %v1670_v7  ;;  %v1591_v43 = vmul.f32 %v1589_v14, %v2996_v33  ;;  %v1597_v47 = vmul.f32 %v1595_v11, %v3350_v34 }
 0x426   : > { %v3428_v3 = vmul.f32 %v1759_v37, %v1671_v1  ;;  %v1604_v31 = vmul.f32 %v1603_v52, %v2999_v58  ;;  %v1610_v40 = vmul.f32 %v1609_v57, %v3358_v15  ;;  %v1764_v4 = vmul.f32 %v1763_v63, %v2999_v58 }
 0x427   : > { %v1502_v0 = vsel %vm1500_vm6, 1.0, %v2240_v61  ;;  %v1605_v7 = vmul.f32 %v1603_v52, %v3010_v60  ;;  %v1611_v2 = vmul.f32 %v1609_v57, %v3367_v17  ;;  %v1765_v1 = vmul.f32 %v1763_v63, %v3010_v60 }
 0x428   : > { %v1592_v13 = vmul.f32 %v1590_v54, %v3176_v6  ;;  %v1598_v18 = vmul.f32 %v1596_v5, %v1494_v62  ;;  %v1799_v22 = vmul.f32 %v1798_v27, %v1726_v28  ;;  %v1800_v37 = vmul.f32 %v1798_v27, %v1727_v20 }
 0x429   : > { %v1593_v58 = vmul.f32 %v1591_v43, %v3181_v10  ;;  %v1599_v14 = vmul.f32 %v1597_v47, %v1495_v9  ;;  %v1606_v11 = vmul.f32 %v1604_v31, %v1494_v62  ;;  %v1612_v42 = vmul.f32 %v1610_v40, %v1502_v0 }
 0x42a   : > { %v1687_v50 = vstv %s3381_s1  ;;  %v1693_v52 = vstv %s3391_s25  ;;  %v1754_v60 = vsub.f32 %v3354_v21, %v3405_v8  ;;  %v1607_v61 = vmul.f32 %v1605_v7, %v1495_v9  ;;  %s1884_s1 = scalar_lea.hbm %s3560_s11, %s2068_s15  ;;  %s524_s25 = scalar_lea.vmem [#allocation7], %s3604_s21 }
 0x42b   : > { %v1613_v6 = vmul.f32 %v1611_v2, %v1503_v29  ;;  %v1701_v63 = vstv %s3403_s14  ;;  %v1755_v28 = vsub.f32 %v3364_v46, %v3407_v55  ;;  %v1802_v10 = vmul.f32 %v1801_v26, %v1740_v16  ;;  %s1885_s14 = sshll.u32 %s524_s25, 4  ;;  %s1886_s14 = int_to_ptr.vmem [resolvable:$true] %s1885_s14 }
 0x42c   : > { %v1600_v20 = vsub.f32 %v1592_v13, %v1598_v18  ;;  %v1707_v27 = vstv %s3415_s12  ;;  %v1601_v57 = vsub.f32 %v1593_v58, %v1599_v14  ;;  %v1688_v54 = vmul.f32 %v1687_v50, %v2971_v53  ;;  %s1887_s12 = sshll.u32 %s1884_s1, 4  ;;  %s1888_s12 = int_to_ptr.hbm [resolvable:$true] %s1887_s12 }
 0x42d   : > { %v1689_v5 = vmul.f32 %v1687_v50, %v2982_v35  ;;  %v1694_v21 = vmul.f32 %v1693_v52, %v3340_v51  ;;  %v1614_v8 = vsub.f32 %v1606_v11, %v1612_v42  ;;  %v1695_v46 = vmul.f32 %v1693_v52, %v3350_v34 }
 0x42e   : > { %v1702_v45 = vmul.f32 %v1701_v63, %v2985_v56  ;;  %v1703_v30 = vmul.f32 %v1701_v63, %v2996_v33  ;;  %v1615_v16 = vsub.f32 %v1607_v61, %v1613_v6  ;;  %v1708_v55 = vmul.f32 %v1707_v27, %v3358_v15 }
 0x42f   : > { %v1709_v62 = vmul.f32 %v1707_v27, %v3367_v17  ;;  %v2065_v43 = vmul.f32 -1.442695, %v2903_v32  ;;  %v1766_v47 = vmul.f32 %v1764_v4, %v3337_v39  ;;  %v1767_v9 = vmul.f32 %v1765_v1, %v3344_v36 }
 0x430   : > { %v1803_v56 = vmul.f32 %v1801_v26, %v1741_v24  ;;  %v2066_v33 = vmul.f32 -1.442695, %v2906_v59  ;;  %v1690_v31 = vmul.f32 %v1688_v54, %v3261_v12  ;;  %v1696_v40 = vmul.f32 %v1694_v21, %v1600_v20 }
 0x431   : > { %v1771_v0 = vstv %s3443_s27  ;;  %2147 = vpow2.f32 %v2065_v43  ;;  %v1691_v7 = vmul.f32 %v1689_v5, %v3263_v49  ;;  %v1697_v2 = vmul.f32 %v1695_v46, %v1601_v57  ;;  %s1874_s27 = scalar_lea.sflag [#allocation3], %s2391_s0 }
 0x432   : > { %v1777_v4 = vstv %s3447_s30  ;;  %2149 = vpow2.f32 %v2066_v33  ;;  %v1704_v1 = vmul.f32 %v1702_v45, %v1600_v20  ;;  %v1705_v29 = vmul.f32 %v1703_v30, %v1601_v57  ;;  %s2184_s30 = sshra.s32 %s1888_s12, 4  ;;  %s2185_s30 = int_to_ptr.hbm [resolvable:$true] %s2184_s30 }
 0x433   : > { %v1710_v19 = vmul.f32 %v1708_v55, %v1614_v8  ;;  %v1711_v25 = vmul.f32 %v1709_v62, %v1615_v16  ;;  %v1804_v13 = vadd.f32 %v1802_v10, %v1799_v22  ;;  %v1805_v24 = vadd.f32 %v1803_v56, %v1800_v37  ;;  %p2191_p5 = scmp.lt.s32.totalorder %s2185_s30, %s3560_s11 }
 0x434   : > { %v1811_v26 = vperm.slane %v3292_v38, 3  ;;  %v1772_v12 = vmul.f32 %v1771_v0, %v2947_v41  ;;  %v1807_v18 = vmul.f32 %v1806_v23, %v1754_v60  ;;  %v1698_v58 = vsub.f32 %v1690_v31, %v1696_v40 }
 0x435   : > { %v1778_v49 = vmul.f32 %v1777_v4, %v3340_v51  ;;  %v1785_v14 = vstv %s3463_s16  ;;  %v1699_v11 = vsub.f32 %v1691_v7, %v1697_v2  ;;  %v1773_v42 = vmul.f32 %v1771_v0, %v2959_v48  ;;  %s2186_s16 = scalar_lea.hbm %s2185_s30, 16 }
 0x436   : > { %v1779_v50 = vmul.f32 %v1777_v4, %v3350_v34  ;;  %v1791_v52 = vstv %s3468_s22  ;;  %v1768_v22 = vsub.f32 %v3417_v44, %v1766_v47  ;;  %v1808_v37 = vmul.f32 %v1806_v23, %v1755_v28  ;;  %p2187_p2 = scmp.ne.s32.totalorder %s2185_s30, %s2186_s16  ;;  %p2192_p7 = scmp.lt.s32.totalorder %s2190_s13, %s2186_s16 }
 0x437   : > { %v2148_v61 = vpop.eup %2147  ;;  %v1712_v41 = vsub.f32 %v1704_v1, %v1710_v19  ;;  %v1713_v6 = vsub.f32 %v1705_v29, %v1711_v25  ;;  %v1774_v60 = vmul.f32 %v1772_v12, %v3337_v39  ;;  %v1786_v51 = vmul.f32 %v1785_v14, %v2971_v53 }
 0x438   : > { %v2150_v63 = vpop.eup %2149  ;;  %v1787_v10 = vmul.f32 %v1785_v14, %v2982_v35  ;;  %v1832_v20 = vadd.f32 1.0, %v2148_v61  ;;  %v1780_v48 = vmul.f32 %v1778_v49, %v1698_v58  ;;  %v1792_v34 = vmul.f32 %v1791_v52, %v3358_v15  ;;  %p2188_p3 = pnand %p2187_p2, %p2347_p6  ;;  %p2193_p8 = por %p2192_p7, %p2191_p5 }
 0x439   : > { %v1793_v27 = vmul.f32 %v1791_v52, %v3367_v17  ;;  %v1833_v57 = vadd.f32 1.0, %v2150_v63  ;;  %v1769_v44 = vsub.f32 %v3428_v3, %v1767_v9  ;;  %v1775_v23 = vmul.f32 %v1773_v42, %v3344_v36 }
 0x43a   : > { %v1781_v28 = vmul.f32 %v1779_v50, %v1699_v11  ;;  %2151 = vrcp.f32 %v1832_v20  ;;  %v1816_v39 = vperm.slane %v3292_v38, 4  ;;  %v1788_v54 = vmul.f32 %v1786_v51, %v1698_v58  ;;  %p2189_p4 = pneg %p2188_p3 }
 0x43b   : > { %2153 = vrcp.f32 %v1833_v57  ;;  %v1809_v53 = vadd.f32 %v1807_v18, %v1804_v13  ;;  %v1810_v5 = vadd.f32 %v1808_v37, %v1805_v24  ;;  %v1782_v35 = vsub.f32 %v1774_v60, %v1780_v48 }
 0x43c   : > { %v1789_v21 = vmul.f32 %v1787_v10, %v1699_v11  ;;  %v1794_v8 = vmul.f32 %v1792_v34, %v1712_v41  ;;  %v1795_v46 = vmul.f32 %v1793_v27, %v1713_v6  ;;  %v1812_v15 = vmul.f32 %v1811_v26, %v1768_v22  ;;  %p2194_p9 = pnand %p2193_p8, %p2189_p4 }
 0x43d   : > { %v1813_v45 = vmul.f32 %v1811_v26, %v1769_v44  ;;  %v1783_v17 = vsub.f32 %v1775_v23, %v1781_v28  ;;  %v1821_v3 = vperm.slane %v3292_v38, 5  ;;  %v1817_v47 = vmul.f32 %v1816_v39, %v1782_v35 }
 0x43e   : > { %v1814_v16 = vadd.f32 %v1812_v15, %v1809_v53  ;;  %v1796_v62 = vsub.f32 %v1788_v54, %v1794_v8  ;;  %v1797_v43 = vsub.f32 %v1789_v21, %v1795_v46  ;;  %vm1839_vm8 = vweird.f32 %v1832_v20 }
 0x43f   : > { %v1815_v36 = vadd.f32 %v1813_v45, %v1810_v5  ;;  %v1818_v56 = vmul.f32 %v1816_v39, %v1783_v17  ;;  %v1845_v33 = vand.u32 2147483648, %v1832_v20  ;;  %v1843_v0 = vand.u32 2147483647, %v1832_v20 }
 0x440   : > { %v2152_v30 = vpop.eup %2151  ;;  %v1860_v7 = vand.u32 2147483648, %v1833_v57  ;;  %vm1854_vm10 = vweird.f32 %v1833_v57  ;;  %v1858_v4 = vand.u32 2147483647, %v1833_v57  ;;  %v1819_v1 = vadd.f32 %v1817_v47, %v1814_v16 }
 0x441   : > { %v2154_v55 = vpop.eup %2153  ;;  %v1835_v9 = vmul.f32 %v2152_v30, %v1832_v20  ;;  %vm1840_vm9 = vweird.f32 %v2152_v30  ;;  %v1820_v19 = vadd.f32 %v1818_v56, %v1815_v36  ;;  %v1846_v13 = vor.u32 1.1754944e-38, %v1845_v33 }
 0x442   : > { %v1850_v31 = vmul.f32 %v2154_v55, %v1833_v57  ;;  %vm1855_vm11 = vweird.f32 %v2154_v55  ;;  %vm3506_vm12 = vmor %vm1839_vm8, %vm1840_vm9  ;;  %v1822_v26 = vmul.f32 %v1821_v3, %v1796_v62  ;;  %vm1844_vm13 = vcmp.eq.f32.partialorder %v1843_v0, 8.507059e+37 }
 0x443   : > { %v1836_v40 = vsub.f32 1.0, %v1835_v9  ;;  %vm1856_vm14 = vmor %vm1854_vm10, %vm1855_vm11  ;;  %v1861_v18 = vor.u32 1.1754944e-38, %v1860_v7  ;;  %v1823_v58 = vmul.f32 %v1821_v3, %v1797_v43  ;;  %vm1859_vm15 = vcmp.eq.f32.partialorder %v1858_v4, 8.507059e+37 }
 0x444   : > { %v1851_v2 = vsub.f32 1.0, %v1850_v31  ;;  %v1824_v14 = vadd.f32 %v1822_v26, %v1819_v1  ;;  %v1868_v6 = vperm.slane %v3292_v38, 6 }
 0x445   : > { %v1837_v29 = vmul.f32 %v2152_v30, %v1836_v40  ;;  %v1825_v42 = vadd.f32 %v1823_v58, %v1820_v19 }
 0x446   : > { %v1852_v24 = vmul.f32 %v2154_v55, %v1851_v2 }
 0x447   : > { %v1838_v12 = vadd.f32 %v2152_v30, %v1837_v29 }
 0x448   : > { %v1853_v49 = vadd.f32 %v2154_v55, %v1852_v24 }
 0x449   : > { %v1842_v11 = vsel %vm3506_vm12, %v2152_v30, %v1838_v12 }
 0x44a   : > { %v1847_v50 = vsel %vm1844_vm13, %v1846_v13, %v1842_v11  ;;  %v1857_v52 = vsel %vm1856_vm14, %v2154_v55, %v1853_v49 }
 0x44b   : > { %v1862_v61 = vsel %vm1859_vm15, %v1861_v18, %v1857_v52  ;;  %v1864_v22 = vmul.f32 %v1847_v50, %v2903_v32 }
 0x44c   : > { %v1865_v37 = vmul.f32 %v1862_v61, %v2906_v59 }
 0x44d   : > { %v1866_v41 = vadd.f32 %v1864_v22, %v1824_v14 }
 0x44e   : > { %v1867_v63 = vadd.f32 %v1865_v37, %v1825_v42 }
 0x44f   : > { %v1869_v60 = vmul.f32 %v1868_v6, %v1866_v41 }
 0x450   : > { %v1870_v51 = vmul.f32 %v1868_v6, %v1867_v63 }
 0x451   : > { %1871 = vst [vmem:[%s524_s25] sm:$0xff] %v1869_v60 }
 0x452   : > { %1872 = vst [vmem:[%s524_s25 + $0x8] sm:$0xff] %v1870_v51 }
 0x453   : > { %2197 = shalt.err (!%p2194_p9)
}
 0x454   : > { %s2241_s0 = smov 128   ;;  %s2242_s21 = smov 384  }
 0x455   : > { %s2243_s25 = smov 8  }
 0x456   : > { %2093 = dma.vmem_to_hbm [thread:$0]  (%p2347_p6), %s1886_s14, 256, %s1888_s12, %s1874_s27, %s2241_s0, %s2242_s21, %s2243_s25  }
 0x457 PF: > { %p2105_p11 = scmp.ge.s32.totalorder %s2236_s20, 2  ;;  %s1902_s22 = sand.u32 1, %s2224_s17  }
 0x458   : > { %s1903_s30 = scalar_lea.sflag [#allocation3], %s1902_s22 }
 0x459   : > { %p2100_p12 = pnand %p2105_p11, %p2353_p10 }
 0x45b   : > { %p2101_p13 = pneg %p2100_p12 }
 0x45d   : > { %2219 = dma.done.wait (%p2101_p13), %s1903_s30, 256  }
 0x45e   : > { %2221 = vsyncadd (%p2101_p13), %s1903_s30, 4294967040  ;;  %p22_p0 = scmp.ge.s32.totalorder %s2329_s23, 5   ;;  %s3605_s17 = smov %s2228_s18 }
 0x45f   : > { %s3606_s18 = smov %s2232_s19  ;;  %s3607_s19 = smov %s2341_s26 }
 0x460   : > { %s3608_s20 = smov %s2329_s23  ;;  %24 = sbr.rel (!%p22_p0) target bundleno = 7 (0x7), region = 193 }
 0x465   :  { %1909 = vsyncpa [#allocation3], 1 }
 0x466   :  { %1911 = vsyncpa [#allocation3 + $0x1], 1 }
 0x467   :  { %1912 = vsyncpa [#allocation4], 1 }
 0x468   :  { %1914 = vsyncpa [#allocation4 + $0x1], 1 }

</bundles_post_ra>
